<compile_context>
chip_gen: v7x
topology: tpu7x:2x2x1
jax: 0.10.0
libtpu: 0.0.40
codegen_flags: <defaults>
</compile_context>

<pallas_src>
import functools

import jax
import jax.numpy as jnp
from jax.experimental import pallas as pl
from jax.experimental.pallas import tpu as pltpu


def _imslstm_kernel(x_ref, wih_ref, bias_ref, whh_ref, wout_ref, bout_ref,
                    hc_ref, h_scr, c_scr, *,
                    t_tile, seq_len, hidden_pad, input_size, unroll):
    """x_ref:   (t_tile, Bp, I)  time tile of the (batch-padded) input.
       wih_ref: (I, 4*Hp)        gate-padded W_ih^T.
       bias_ref:(1, 4*Hp)        gate-padded (b_ih + b_hh).
       whh_ref: (Hp, 4*Hp)       gate-padded W_hh^T.
       wout_ref:(Hp, 128)        lane-padded output-head weights (2 real cols).
       bout_ref:(1, 128)         lane-padded output-head bias.
       hc_ref:  (3, Bp, Hp)      [0]=h_T, [1]=c_T, [2]=head (2 real lanes).
       h_scr/c_scr: (Bp, Hp)     recurrent state carried across grid steps."""
    Hp = hidden_pad
    pid = pl.program_id(0)
    last = pl.num_programs(0) - 1
    base = pid * t_tile

    @pl.when(pid == 0)
    def _():
        h_scr[...] = jnp.zeros_like(h_scr)
        c_scr[...] = jnp.zeros_like(c_scr)

    def step(t, carry):
        h, c = carry
        x_t = x_ref[t]                                        # (Bp, I)
        # Input projection + bias.  For tiny I this is a VPU broadcast-mul-add
        # rather than a degenerate K=I MXU matmul.
        if input_size <= 8:
            xw = bias_ref[...]
            for ii in range(input_size):
                xw = xw + x_t[:, ii:ii + 1] * wih_ref[ii:ii + 1, :]
        else:
            xw = jnp.dot(x_t, wih_ref[...],
                         preferred_element_type=jnp.float32) + bias_ref[...]
        # Recurrent matmul.  W_hh^T is (re)read from VMEM each step (vld is
        # cheap) instead of being held live across the whole loop.
        gates = xw + jnp.dot(h, whh_ref[...],
                             preferred_element_type=jnp.float32)
        # Gate layout [i, f, o, g]: one wide sigmoid + one tanh per step.
        sg = jax.nn.sigmoid(gates[:, :3 * Hp])
        i_g = sg[:, 0 * Hp:1 * Hp]
        f_g = sg[:, 1 * Hp:2 * Hp]
        o_g = sg[:, 2 * Hp:3 * Hp]
        g_g = jnp.tanh(gates[:, 3 * Hp:4 * Hp])
        c_new = f_g * c + i_g * g_g
        h_new = o_g * jnp.tanh(c_new)
        # Guard time-padding (T rounded up to a multiple of t_tile).
        valid = (base + t) < seq_len
        h = jnp.where(valid, h_new, h)
        c = jnp.where(valid, c_new, c)
        return (h, c)

    h_n, c_n = jax.lax.fori_loop(0, t_tile, step, (h_scr[...], c_scr[...]),
                                 unroll=unroll)
    h_scr[...] = h_n
    c_scr[...] = c_n

    @pl.when(pid == last)
    def _():
        hc_ref[0] = h_n
        hc_ref[1] = c_n
        # Fused output head: ReLU -> Linear(H, 2), lane-padded to 128 cols so
        # the store stays unmasked.
        head = jnp.dot(jnp.maximum(h_n, 0.0), wout_ref[...],
                       preferred_element_type=jnp.float32) + bout_ref[...]
        hc_ref[2] = head


def _pad_gate_cols(m, h, hp, rows_out, order=(0, 1, 3, 2)):
    """(R, 4h) -> (rows_out, 4hp).  PyTorch gate blocks [i,f,g,o] are placed
    at 128-aligned column offsets in kernel order [i,f,o,g]; padding is 0."""
    r = m.shape[0]
    out = jnp.zeros((rows_out, 4 * hp), m.dtype)
    for k, src in enumerate(order):
        out = out.at[:r, k * hp:k * hp + h].set(m[:, src * h:(src + 1) * h])
    return out


@jax.jit
def imslstm_forward(x, params):
    """x: (B, T, I) float32. Returns (mu (B,), sigma (B,), (h_n, c_n))."""
    w_ih, w_hh, b_ih, b_hh, w_out, b_out = params
    B, T, I = x.shape
    H = w_hh.shape[1]
    Hp = max(128, ((H + 127) // 128) * 128)      # lane-align hidden / gates
    Bp = max(8, ((B + 7) // 8) * 8)              # sublane-align batch

    # Time tile: small enough to double-buffer comfortably on v7x's 64 MiB
    # VMEM (at I=1 an x tile is tiny; weights dominate), large enough to
    # amortize per-grid-step overhead.
    t_tile = min(T, 64)
    n_tiles = -(-T // t_tile)
    Tp = n_tiles * t_tile
    unroll = min(t_tile, 8)                      # capped unroll, not full

    # Gate-padded, pre-transposed weights / bias (kernel gate order [i,f,o,g]).
    wih_p = _pad_gate_cols(jnp.transpose(w_ih), H, Hp, I)          # (I, 4Hp)
    whh_p = _pad_gate_cols(jnp.transpose(w_hh), H, Hp, Hp)         # (Hp, 4Hp)
    bias_p = _pad_gate_cols((b_ih + b_hh)[None, :], H, Hp, 1)      # (1, 4Hp)

    # Lane-padded output head (2 real columns out of 128).
    wout_p = jnp.zeros((Hp, 128), jnp.float32).at[:H, :2].set(jnp.transpose(w_out))
    bout_p = jnp.zeros((1, 128), jnp.float32).at[0, :2].set(b_out)

    # Time-major, batch- and time-padded raw input (no xw slab materialized).
    x_tm = jnp.transpose(x, (1, 0, 2))                             # (T, B, I)
    x_tm = jnp.pad(x_tm, ((0, Tp - T), (0, Bp - B), (0, 0)))       # (Tp, Bp, I)

    # VMEM budget + advisory cost estimate.
    vmem_words = (2 * t_tile * Bp * I            # x tile (double-buffered)
                  + I * 4 * Hp + 4 * Hp          # W_ih^T + bias
                  + Hp * 4 * Hp                  # W_hh^T
                  + Hp * 128 + 128               # head weights + bias
                  + 3 * Bp * Hp                  # output block
                  + 2 * Bp * Hp)                 # h/c scratch
    vmem_limit = int(min(max(8 * vmem_words + (1 << 20), 8 << 20), 48 << 20))
    flops = int(2 * T * Bp * (I + Hp) * 4 * Hp + 12 * T * Bp * Hp
                + 2 * Bp * Hp * 128)
    transc = int(5 * T * Bp * Hp)
    bytes_acc = int(4 * (Tp * Bp * I + I * 4 * Hp + Hp * 4 * Hp + 4 * Hp
                         + Hp * 128 + 128 + 3 * Bp * Hp))

    kernel = functools.partial(
        _imslstm_kernel, t_tile=t_tile, seq_len=T, hidden_pad=Hp,
        input_size=I, unroll=unroll)

    hc = pl.pallas_call(
        kernel,
        out_shape=jax.ShapeDtypeStruct((3, Bp, Hp), jnp.float32),
        grid_spec=pltpu.PrefetchScalarGridSpec(
            num_scalar_prefetch=0,
            grid=(n_tiles,),
            in_specs=[
                pl.BlockSpec((t_tile, Bp, I), lambda t: (t, 0, 0)),   # x tile
                pl.BlockSpec((I, 4 * Hp), lambda t: (0, 0)),          # W_ih^T
                pl.BlockSpec((1, 4 * Hp), lambda t: (0, 0)),          # bias
                pl.BlockSpec((Hp, 4 * Hp), lambda t: (0, 0)),         # W_hh^T
                pl.BlockSpec((Hp, 128), lambda t: (0, 0)),            # W_out^T
                pl.BlockSpec((1, 128), lambda t: (0, 0)),             # b_out
            ],
            out_specs=pl.BlockSpec((3, Bp, Hp), lambda t: (0, 0, 0)),
            scratch_shapes=[pltpu.VMEM((Bp, Hp), jnp.float32),        # h
                            pltpu.VMEM((Bp, Hp), jnp.float32)],       # c
        ),
        compiler_params=pltpu.CompilerParams(
            dimension_semantics=("arbitrary",),
            vmem_limit_bytes=vmem_limit),
        cost_estimate=pl.CostEstimate(
            flops=flops, transcendentals=transc, bytes_accessed=bytes_acc),
    )(x_tm, wih_p, bias_p, whh_p, wout_p, bout_p)

    h_n = hc[0, :B, :H]
    c_n = hc[1, :B, :H]
    head = hc[2, :B, :2]
    mu = head[:, 0]
    sigma = jnp.exp(jnp.clip(head[:, 1], -5.0, 5.0))
    hidden = (h_n[None, :, :], c_n[None, :, :])                       # (1,B,H)
    return mu, sigma, hidden


def imslstm_reference(x, params):
    """Pure-JAX reference replicating the PyTorch forward exactly."""
    w_ih, w_hh, b_ih, b_hh, w_out, b_out = params
    B, T, I = x.shape
    H = w_hh.shape[1]

    def step(carry, x_t):
        h, c = carry
        gates = x_t @ w_ih.T + b_ih + h @ w_hh.T + b_hh
        i = jax.nn.sigmoid(gates[:, 0 * H:1 * H])
        f = jax.nn.sigmoid(gates[:, 1 * H:2 * H])
        g = jnp.tanh(gates[:, 2 * H:3 * H])
        o = jax.nn.sigmoid(gates[:, 3 * H:4 * H])
        c = f * c + i * g
        h = o * jnp.tanh(c)
        return (h, c), None

    h0 = jnp.zeros((B, H), jnp.float32)
    c0 = jnp.zeros((B, H), jnp.float32)
    (h_n, c_n), _ = jax.lax.scan(step, (h0, c0), jnp.transpose(x, (1, 0, 2)))
    last = jnp.maximum(h_n, 0.0)
    out = last @ w_out.T + b_out
    mu = out[:, 0]
    sigma = jnp.exp(jnp.clip(out[:, 1], -5.0, 5.0))
    return mu, sigma, (h_n[None], c_n[None])


def init_params(key, input_size, hidden_size):
    # PyTorch nn.LSTM / nn.Linear default: U(-1/sqrt(H), 1/sqrt(H)).
    ks = jax.random.split(key, 6)
    bound = 1.0 / jnp.sqrt(float(hidden_size))
    u = lambda k, shp: jax.random.uniform(k, shp, jnp.float32, -bound, bound)
    w_ih = u(ks[0], (4 * hidden_size, input_size))
    w_hh = u(ks[1], (4 * hidden_size, hidden_size))
    b_ih = u(ks[2], (4 * hidden_size,))
    b_hh = u(ks[3], (4 * hidden_size,))
    w_out = u(ks[4], (2, hidden_size))
    b_out = u(ks[5], (2,))
    return (w_ih, w_hh, b_ih, b_hh, w_out, b_out)


if __name__ == "__main__":
    # Module defaults: input_size=1, hidden_size=64, num_layers=1.
    B, T, I, H = 4, 8, 1, 64

    key = jax.random.PRNGKey(0)
    k_x, k_p = jax.random.split(key)
    x = jax.random.normal(k_x, (B, T, I), jnp.float32)
    params = init_params(k_p, I, H)

    mu, sigma, (h_n, c_n) = jax.block_until_ready(imslstm_forward(x, params))
    mu_r, sigma_r, (h_r, c_r) = jax.block_until_ready(imslstm_reference(x, params))

    assert jnp.allclose(mu, mu_r, atol=1e-5, rtol=1e-5)
    assert jnp.allclose(sigma, sigma_r, atol=1e-5, rtol=1e-5)
    assert jnp.allclose(h_n, h_r, atol=1e-5, rtol=1e-5)
    assert jnp.allclose(c_n, c_r, atol=1e-5, rtol=1e-5)
    assert mu.shape == (B,) and sigma.shape == (B,)
    assert h_n.shape == (1, B, H) and c_n.shape == (1, B, H)

    print("KERNEL_OK")
</pallas_src>

<mosaic_0001>
module attributes {stable_mosaic.version = 11 : i64} {
  func.func @_imslstm_kernel(%arg0: i32, %arg1: memref<8x8x1xf32, #tpu.memory_space<vmem>>, %arg2: memref<1x512xf32, #tpu.memory_space<vmem>>, %arg3: memref<1x512xf32, #tpu.memory_space<vmem>>, %arg4: memref<128x512xf32, #tpu.memory_space<vmem>>, %arg5: memref<128x128xf32, #tpu.memory_space<vmem>>, %arg6: memref<1x128xf32, #tpu.memory_space<vmem>>, %arg7: memref<3x8x128xf32, #tpu.memory_space<vmem>>, %arg8: memref<8x128xf32, #tpu.memory_space<vmem>>, %arg9: memref<8x128xf32, #tpu.memory_space<vmem>>) attributes {dimension_semantics = [#tpu.dimension_semantics<arbitrary>], iteration_bounds = array<i64: 1>, scalar_prefetch = 0 : i64, scratch_operands = 2 : i64, tpu.core_type = #tpu.core_type<tc>, window_params = [{transform_indices = @transform_0, window_bounds = array<i64: 8, 8, 1>}, {pipeline_mode = #tpu.pipeline_mode<synchronous>, transform_indices = @transform_1, window_bounds = array<i64: 1, 512>}, {pipeline_mode = #tpu.pipeline_mode<synchronous>, transform_indices = @transform_2, window_bounds = array<i64: 1, 512>}, {pipeline_mode = #tpu.pipeline_mode<synchronous>, transform_indices = @transform_3, window_bounds = array<i64: 128, 512>}, {pipeline_mode = #tpu.pipeline_mode<synchronous>, transform_indices = @transform_4, window_bounds = array<i64: 128, 128>}, {pipeline_mode = #tpu.pipeline_mode<synchronous>, transform_indices = @transform_5, window_bounds = array<i64: 1, 128>}, {pipeline_mode = #tpu.pipeline_mode<synchronous>, transform_indices = @transform_6, window_bounds = array<i64: 3, 8, 128>}]} {
    %c8_i32 = arith.constant 8 : i32
    %0 = arith.muli %arg0, %c8_i32 : i32
    %c0_i32 = arith.constant 0 : i32
    %1 = arith.cmpi eq, %arg0, %c0_i32 : i32
    %2 = arith.extui %1 : i1 to i32
    %c0_i32_0 = arith.constant 0 : i32
    %3 = arith.cmpi ne, %2, %c0_i32_0 : i32
    scf.if %3 {
      %cst_99 = arith.constant 0.000000e+00 : f32
      %275 = vector.broadcast %cst_99 : f32 to vector<8x128xf32>
      %c0_100 = arith.constant 0 : index
      %c0_101 = arith.constant 0 : index
      %276 = vector.load %arg8[%c0_100, %c0_101] : memref<8x128xf32, #tpu.memory_space<vmem>>, vector<8x128xf32>
      tpu.vector_store %arg8[%c0_100, %c0_101], %275 {strides = array<i32>} : memref<8x128xf32, #tpu.memory_space<vmem>>, vector<8x128xf32>,
      %cst_102 = arith.constant 0.000000e+00 : f32
      %277 = vector.broadcast %cst_102 : f32 to vector<8x128xf32>
      %c0_103 = arith.constant 0 : index
      %c0_104 = arith.constant 0 : index
      %278 = vector.load %arg9[%c0_103, %c0_104] : memref<8x128xf32, #tpu.memory_space<vmem>>, vector<8x128xf32>
      tpu.vector_store %arg9[%c0_103, %c0_104], %277 {strides = array<i32>} : memref<8x128xf32, #tpu.memory_space<vmem>>, vector<8x128xf32>,
    } else {
    }
    %c0 = arith.constant 0 : index
    %c0_1 = arith.constant 0 : index
    %4 = vector.load %arg8[%c0, %c0_1] : memref<8x128xf32, #tpu.memory_space<vmem>>, vector<8x128xf32>
    %c0_2 = arith.constant 0 : index
    %c0_3 = arith.constant 0 : index
    %5 = vector.load %arg9[%c0_2, %c0_3] : memref<8x128xf32, #tpu.memory_space<vmem>>, vector<8x128xf32>
    %c0_i32_4 = arith.constant 0 : i32
    %6 = arith.index_cast %c0_i32_4 : i32 to index
    %c0_5 = arith.constant 0 : index
    %c0_6 = arith.constant 0 : index
    %7 = vector.load %arg1[%6, %c0_5, %c0_6] : memref<8x8x1xf32, #tpu.memory_space<vmem>>, vector<1x8x1xf32>
    %8 = vector.shape_cast %7 : vector<1x8x1xf32> to vector<8x1xf32>
    %c0_7 = arith.constant 0 : index
    %c0_8 = arith.constant 0 : index
    %9 = vector.load %arg3[%c0_7, %c0_8] : memref<1x512xf32, #tpu.memory_space<vmem>>, vector<1x512xf32>
    %c0_9 = arith.constant 0 : index
    %c0_10 = arith.constant 0 : index
    %10 = vector.load %arg2[%c0_9, %c0_10] : memref<1x512xf32, #tpu.memory_space<vmem>>, vector<1x512xf32>
    %11 = vector.broadcast %8 : vector<8x1xf32> to vector<8x512xf32>
    %12 = vector.broadcast %10 : vector<1x512xf32> to vector<8x512xf32>
    %13 = arith.mulf %11, %12 : vector<8x512xf32>
    %14 = vector.broadcast %9 : vector<1x512xf32> to vector<8x512xf32>
    %15 = arith.addf %14, %13 : vector<8x512xf32>
    %c0_11 = arith.constant 0 : index
    %c0_12 = arith.constant 0 : index
    %16 = vector.load %arg4[%c0_11, %c0_12] : memref<128x512xf32, #tpu.memory_space<vmem>>, vector<128x512xf32>
    %cst = arith.constant dense<0.000000e+00> : vector<8x512xf32>
    %17 = tpu.matmul %4, %16, %cst {dimension_numbers = #tpu.dot_dimension_numbers<[1], [0], [0], [1], [0, 0, 1, 1], [], []>} : vector<8x128xf32>, vector<128x512xf32>, vector<8x512xf32> -> vector<8x512xf32>
    %18 = arith.addf %15, %17 : vector<8x512xf32>
    %19 = vector.extract_strided_slice %18 {offsets = [0, 0], sizes = [8, 384], strides = [1, 1]} : vector<8x512xf32> to vector<8x384xf32>
    %20 = arith.negf %19 : vector<8x384xf32>
    %21 = math.exp %20 : vector<8x384xf32>
    %cst_13 = arith.constant 1.000000e+00 : f32
    %22 = vector.broadcast %cst_13 : f32 to vector<8x384xf32>
    %23 = arith.addf %22, %21 : vector<8x384xf32>
    %24 = arith.divf %22, %23 : vector<8x384xf32>
    %25 = vector.extract_strided_slice %24 {offsets = [0, 0], sizes = [8, 128], strides = [1, 1]} : vector<8x384xf32> to vector<8x128xf32>
    %26 = vector.extract_strided_slice %24 {offsets = [0, 128], sizes = [8, 128], strides = [1, 1]} : vector<8x384xf32> to vector<8x128xf32>
    %27 = vector.extract_strided_slice %24 {offsets = [0, 256], sizes = [8, 128], strides = [1, 1]} : vector<8x384xf32> to vector<8x128xf32>
    %28 = vector.extract_strided_slice %18 {offsets = [0, 384], sizes = [8, 128], strides = [1, 1]} : vector<8x512xf32> to vector<8x128xf32>
    %29 = math.tanh %28 : vector<8x128xf32>
    %30 = arith.mulf %26, %5 : vector<8x128xf32>
    %31 = arith.mulf %25, %29 : vector<8x128xf32>
    %32 = arith.addf %30, %31 : vector<8x128xf32>
    %33 = math.tanh %32 : vector<8x128xf32>
    %34 = arith.mulf %27, %33 : vector<8x128xf32>
    %35 = arith.addi %0, %c0_i32_4 : i32
    %c8_i32_14 = arith.constant 8 : i32
    %36 = arith.cmpi slt, %35, %c8_i32_14 : i32
    %37 = arith.select %36, %34, %4 : vector<8x128xf32>
    %38 = arith.select %36, %32, %5 : vector<8x128xf32>
    %c1_i32 = arith.constant 1 : i32
    %39 = arith.index_cast %c1_i32 : i32 to index
    %c0_15 = arith.constant 0 : index
    %c0_16 = arith.constant 0 : index
    %40 = vector.load %arg1[%39, %c0_15, %c0_16] : memref<8x8x1xf32, #tpu.memory_space<vmem>>, vector<1x8x1xf32>
    %41 = vector.shape_cast %40 : vector<1x8x1xf32> to vector<8x1xf32>
    %c0_17 = arith.constant 0 : index
    %c0_18 = arith.constant 0 : index
    %42 = vector.load %arg3[%c0_17, %c0_18] : memref<1x512xf32, #tpu.memory_space<vmem>>, vector<1x512xf32>
    %c0_19 = arith.constant 0 : index
    %c0_20 = arith.constant 0 : index
    %43 = vector.load %arg2[%c0_19, %c0_20] : memref<1x512xf32, #tpu.memory_space<vmem>>, vector<1x512xf32>
    %44 = vector.broadcast %41 : vector<8x1xf32> to vector<8x512xf32>
    %45 = vector.broadcast %43 : vector<1x512xf32> to vector<8x512xf32>
    %46 = arith.mulf %44, %45 : vector<8x512xf32>
    %47 = vector.broadcast %42 : vector<1x512xf32> to vector<8x512xf32>
    %48 = arith.addf %47, %46 : vector<8x512xf32>
    %c0_21 = arith.constant 0 : index
    %c0_22 = arith.constant 0 : index
    %49 = vector.load %arg4[%c0_21, %c0_22] : memref<128x512xf32, #tpu.memory_space<vmem>>, vector<128x512xf32>
    %cst_23 = arith.constant dense<0.000000e+00> : vector<8x512xf32>
    %50 = tpu.matmul %37, %49, %cst_23 {dimension_numbers = #tpu.dot_dimension_numbers<[1], [0], [0], [1], [0, 0, 1, 1], [], []>} : vector<8x128xf32>, vector<128x512xf32>, vector<8x512xf32> -> vector<8x512xf32>
    %51 = arith.addf %48, %50 : vector<8x512xf32>
    %52 = vector.extract_strided_slice %51 {offsets = [0, 0], sizes = [8, 384], strides = [1, 1]} : vector<8x512xf32> to vector<8x384xf32>
    %53 = arith.negf %52 : vector<8x384xf32>
    %54 = math.exp %53 : vector<8x384xf32>
    %cst_24 = arith.constant 1.000000e+00 : f32
    %55 = vector.broadcast %cst_24 : f32 to vector<8x384xf32>
    %56 = arith.addf %55, %54 : vector<8x384xf32>
    %57 = arith.divf %55, %56 : vector<8x384xf32>
    %58 = vector.extract_strided_slice %57 {offsets = [0, 0], sizes = [8, 128], strides = [1, 1]} : vector<8x384xf32> to vector<8x128xf32>
    %59 = vector.extract_strided_slice %57 {offsets = [0, 128], sizes = [8, 128], strides = [1, 1]} : vector<8x384xf32> to vector<8x128xf32>
    %60 = vector.extract_strided_slice %57 {offsets = [0, 256], sizes = [8, 128], strides = [1, 1]} : vector<8x384xf32> to vector<8x128xf32>
    %61 = vector.extract_strided_slice %51 {offsets = [0, 384], sizes = [8, 128], strides = [1, 1]} : vector<8x512xf32> to vector<8x128xf32>
    %62 = math.tanh %61 : vector<8x128xf32>
    %63 = arith.mulf %59, %38 : vector<8x128xf32>
    %64 = arith.mulf %58, %62 : vector<8x128xf32>
    %65 = arith.addf %63, %64 : vector<8x128xf32>
    %66 = math.tanh %65 : vector<8x128xf32>
    %67 = arith.mulf %60, %66 : vector<8x128xf32>
    %68 = arith.addi %0, %c1_i32 : i32
    %c8_i32_25 = arith.constant 8 : i32
    %69 = arith.cmpi slt, %68, %c8_i32_25 : i32
    %70 = arith.select %69, %67, %37 : vector<8x128xf32>
    %71 = arith.select %69, %65, %38 : vector<8x128xf32>
    %c2_i32 = arith.constant 2 : i32
    %72 = arith.index_cast %c2_i32 : i32 to index
    %c0_26 = arith.constant 0 : index
    %c0_27 = arith.constant 0 : index
    %73 = vector.load %arg1[%72, %c0_26, %c0_27] : memref<8x8x1xf32, #tpu.memory_space<vmem>>, vector<1x8x1xf32>
    %74 = vector.shape_cast %73 : vector<1x8x1xf32> to vector<8x1xf32>
    %c0_28 = arith.constant 0 : index
    %c0_29 = arith.constant 0 : index
    %75 = vector.load %arg3[%c0_28, %c0_29] : memref<1x512xf32, #tpu.memory_space<vmem>>, vector<1x512xf32>
    %c0_30 = arith.constant 0 : index
    %c0_31 = arith.constant 0 : index
    %76 = vector.load %arg2[%c0_30, %c0_31] : memref<1x512xf32, #tpu.memory_space<vmem>>, vector<1x512xf32>
    %77 = vector.broadcast %74 : vector<8x1xf32> to vector<8x512xf32>
    %78 = vector.broadcast %76 : vector<1x512xf32> to vector<8x512xf32>
    %79 = arith.mulf %77, %78 : vector<8x512xf32>
    %80 = vector.broadcast %75 : vector<1x512xf32> to vector<8x512xf32>
    %81 = arith.addf %80, %79 : vector<8x512xf32>
    %c0_32 = arith.constant 0 : index
    %c0_33 = arith.constant 0 : index
    %82 = vector.load %arg4[%c0_32, %c0_33] : memref<128x512xf32, #tpu.memory_space<vmem>>, vector<128x512xf32>
    %cst_34 = arith.constant dense<0.000000e+00> : vector<8x512xf32>
    %83 = tpu.matmul %70, %82, %cst_34 {dimension_numbers = #tpu.dot_dimension_numbers<[1], [0], [0], [1], [0, 0, 1, 1], [], []>} : vector<8x128xf32>, vector<128x512xf32>, vector<8x512xf32> -> vector<8x512xf32>
    %84 = arith.addf %81, %83 : vector<8x512xf32>
    %85 = vector.extract_strided_slice %84 {offsets = [0, 0], sizes = [8, 384], strides = [1, 1]} : vector<8x512xf32> to vector<8x384xf32>
    %86 = arith.negf %85 : vector<8x384xf32>
    %87 = math.exp %86 : vector<8x384xf32>
    %cst_35 = arith.constant 1.000000e+00 : f32
    %88 = vector.broadcast %cst_35 : f32 to vector<8x384xf32>
    %89 = arith.addf %88, %87 : vector<8x384xf32>
    %90 = arith.divf %88, %89 : vector<8x384xf32>
    %91 = vector.extract_strided_slice %90 {offsets = [0, 0], sizes = [8, 128], strides = [1, 1]} : vector<8x384xf32> to vector<8x128xf32>
    %92 = vector.extract_strided_slice %90 {offsets = [0, 128], sizes = [8, 128], strides = [1, 1]} : vector<8x384xf32> to vector<8x128xf32>
    %93 = vector.extract_strided_slice %90 {offsets = [0, 256], sizes = [8, 128], strides = [1, 1]} : vector<8x384xf32> to vector<8x128xf32>
    %94 = vector.extract_strided_slice %84 {offsets = [0, 384], sizes = [8, 128], strides = [1, 1]} : vector<8x512xf32> to vector<8x128xf32>
    %95 = math.tanh %94 : vector<8x128xf32>
    %96 = arith.mulf %92, %71 : vector<8x128xf32>
    %97 = arith.mulf %91, %95 : vector<8x128xf32>
    %98 = arith.addf %96, %97 : vector<8x128xf32>
    %99 = math.tanh %98 : vector<8x128xf32>
    %100 = arith.mulf %93, %99 : vector<8x128xf32>
    %101 = arith.addi %0, %c2_i32 : i32
    %c8_i32_36 = arith.constant 8 : i32
    %102 = arith.cmpi slt, %101, %c8_i32_36 : i32
    %103 = arith.select %102, %100, %70 : vector<8x128xf32>
    %104 = arith.select %102, %98, %71 : vector<8x128xf32>
    %c3_i32 = arith.constant 3 : i32
    %105 = arith.index_cast %c3_i32 : i32 to index
    %c0_37 = arith.constant 0 : index
    %c0_38 = arith.constant 0 : index
    %106 = vector.load %arg1[%105, %c0_37, %c0_38] : memref<8x8x1xf32, #tpu.memory_space<vmem>>, vector<1x8x1xf32>
    %107 = vector.shape_cast %106 : vector<1x8x1xf32> to vector<8x1xf32>
    %c0_39 = arith.constant 0 : index
    %c0_40 = arith.constant 0 : index
    %108 = vector.load %arg3[%c0_39, %c0_40] : memref<1x512xf32, #tpu.memory_space<vmem>>, vector<1x512xf32>
    %c0_41 = arith.constant 0 : index
    %c0_42 = arith.constant 0 : index
    %109 = vector.load %arg2[%c0_41, %c0_42] : memref<1x512xf32, #tpu.memory_space<vmem>>, vector<1x512xf32>
    %110 = vector.broadcast %107 : vector<8x1xf32> to vector<8x512xf32>
    %111 = vector.broadcast %109 : vector<1x512xf32> to vector<8x512xf32>
    %112 = arith.mulf %110, %111 : vector<8x512xf32>
    %113 = vector.broadcast %108 : vector<1x512xf32> to vector<8x512xf32>
    %114 = arith.addf %113, %112 : vector<8x512xf32>
    %c0_43 = arith.constant 0 : index
    %c0_44 = arith.constant 0 : index
    %115 = vector.load %arg4[%c0_43, %c0_44] : memref<128x512xf32, #tpu.memory_space<vmem>>, vector<128x512xf32>
    %cst_45 = arith.constant dense<0.000000e+00> : vector<8x512xf32>
    %116 = tpu.matmul %103, %115, %cst_45 {dimension_numbers = #tpu.dot_dimension_numbers<[1], [0], [0], [1], [0, 0, 1, 1], [], []>} : vector<8x128xf32>, vector<128x512xf32>, vector<8x512xf32> -> vector<8x512xf32>
    %117 = arith.addf %114, %116 : vector<8x512xf32>
    %118 = vector.extract_strided_slice %117 {offsets = [0, 0], sizes = [8, 384], strides = [1, 1]} : vector<8x512xf32> to vector<8x384xf32>
    %119 = arith.negf %118 : vector<8x384xf32>
    %120 = math.exp %119 : vector<8x384xf32>
    %cst_46 = arith.constant 1.000000e+00 : f32
    %121 = vector.broadcast %cst_46 : f32 to vector<8x384xf32>
    %122 = arith.addf %121, %120 : vector<8x384xf32>
    %123 = arith.divf %121, %122 : vector<8x384xf32>
    %124 = vector.extract_strided_slice %123 {offsets = [0, 0], sizes = [8, 128], strides = [1, 1]} : vector<8x384xf32> to vector<8x128xf32>
    %125 = vector.extract_strided_slice %123 {offsets = [0, 128], sizes = [8, 128], strides = [1, 1]} : vector<8x384xf32> to vector<8x128xf32>
    %126 = vector.extract_strided_slice %123 {offsets = [0, 256], sizes = [8, 128], strides = [1, 1]} : vector<8x384xf32> to vector<8x128xf32>
    %127 = vector.extract_strided_slice %117 {offsets = [0, 384], sizes = [8, 128], strides = [1, 1]} : vector<8x512xf32> to vector<8x128xf32>
    %128 = math.tanh %127 : vector<8x128xf32>
    %129 = arith.mulf %125, %104 : vector<8x128xf32>
    %130 = arith.mulf %124, %128 : vector<8x128xf32>
    %131 = arith.addf %129, %130 : vector<8x128xf32>
    %132 = math.tanh %131 : vector<8x128xf32>
    %133 = arith.mulf %126, %132 : vector<8x128xf32>
    %134 = arith.addi %0, %c3_i32 : i32
    %c8_i32_47 = arith.constant 8 : i32
    %135 = arith.cmpi slt, %134, %c8_i32_47 : i32
    %136 = arith.select %135, %133, %103 : vector<8x128xf32>
    %137 = arith.select %135, %131, %104 : vector<8x128xf32>
    %c4_i32 = arith.constant 4 : i32
    %138 = arith.index_cast %c4_i32 : i32 to index
    %c0_48 = arith.constant 0 : index
    %c0_49 = arith.constant 0 : index
    %139 = vector.load %arg1[%138, %c0_48, %c0_49] : memref<8x8x1xf32, #tpu.memory_space<vmem>>, vector<1x8x1xf32>
    %140 = vector.shape_cast %139 : vector<1x8x1xf32> to vector<8x1xf32>
    %c0_50 = arith.constant 0 : index
    %c0_51 = arith.constant 0 : index
    %141 = vector.load %arg3[%c0_50, %c0_51] : memref<1x512xf32, #tpu.memory_space<vmem>>, vector<1x512xf32>
    %c0_52 = arith.constant 0 : index
    %c0_53 = arith.constant 0 : index
    %142 = vector.load %arg2[%c0_52, %c0_53] : memref<1x512xf32, #tpu.memory_space<vmem>>, vector<1x512xf32>
    %143 = vector.broadcast %140 : vector<8x1xf32> to vector<8x512xf32>
    %144 = vector.broadcast %142 : vector<1x512xf32> to vector<8x512xf32>
    %145 = arith.mulf %143, %144 : vector<8x512xf32>
    %146 = vector.broadcast %141 : vector<1x512xf32> to vector<8x512xf32>
    %147 = arith.addf %146, %145 : vector<8x512xf32>
    %c0_54 = arith.constant 0 : index
    %c0_55 = arith.constant 0 : index
    %148 = vector.load %arg4[%c0_54, %c0_55] : memref<128x512xf32, #tpu.memory_space<vmem>>, vector<128x512xf32>
    %cst_56 = arith.constant dense<0.000000e+00> : vector<8x512xf32>
    %149 = tpu.matmul %136, %148, %cst_56 {dimension_numbers = #tpu.dot_dimension_numbers<[1], [0], [0], [1], [0, 0, 1, 1], [], []>} : vector<8x128xf32>, vector<128x512xf32>, vector<8x512xf32> -> vector<8x512xf32>
    %150 = arith.addf %147, %149 : vector<8x512xf32>
    %151 = vector.extract_strided_slice %150 {offsets = [0, 0], sizes = [8, 384], strides = [1, 1]} : vector<8x512xf32> to vector<8x384xf32>
    %152 = arith.negf %151 : vector<8x384xf32>
    %153 = math.exp %152 : vector<8x384xf32>
    %cst_57 = arith.constant 1.000000e+00 : f32
    %154 = vector.broadcast %cst_57 : f32 to vector<8x384xf32>
    %155 = arith.addf %154, %153 : vector<8x384xf32>
    %156 = arith.divf %154, %155 : vector<8x384xf32>
    %157 = vector.extract_strided_slice %156 {offsets = [0, 0], sizes = [8, 128], strides = [1, 1]} : vector<8x384xf32> to vector<8x128xf32>
    %158 = vector.extract_strided_slice %156 {offsets = [0, 128], sizes = [8, 128], strides = [1, 1]} : vector<8x384xf32> to vector<8x128xf32>
    %159 = vector.extract_strided_slice %156 {offsets = [0, 256], sizes = [8, 128], strides = [1, 1]} : vector<8x384xf32> to vector<8x128xf32>
    %160 = vector.extract_strided_slice %150 {offsets = [0, 384], sizes = [8, 128], strides = [1, 1]} : vector<8x512xf32> to vector<8x128xf32>
    %161 = math.tanh %160 : vector<8x128xf32>
    %162 = arith.mulf %158, %137 : vector<8x128xf32>
    %163 = arith.mulf %157, %161 : vector<8x128xf32>
    %164 = arith.addf %162, %163 : vector<8x128xf32>
    %165 = math.tanh %164 : vector<8x128xf32>
    %166 = arith.mulf %159, %165 : vector<8x128xf32>
    %167 = arith.addi %0, %c4_i32 : i32
    %c8_i32_58 = arith.constant 8 : i32
    %168 = arith.cmpi slt, %167, %c8_i32_58 : i32
    %169 = arith.select %168, %166, %136 : vector<8x128xf32>
    %170 = arith.select %168, %164, %137 : vector<8x128xf32>
    %c5_i32 = arith.constant 5 : i32
    %171 = arith.index_cast %c5_i32 : i32 to index
    %c0_59 = arith.constant 0 : index
    %c0_60 = arith.constant 0 : index
    %172 = vector.load %arg1[%171, %c0_59, %c0_60] : memref<8x8x1xf32, #tpu.memory_space<vmem>>, vector<1x8x1xf32>
    %173 = vector.shape_cast %172 : vector<1x8x1xf32> to vector<8x1xf32>
    %c0_61 = arith.constant 0 : index
    %c0_62 = arith.constant 0 : index
    %174 = vector.load %arg3[%c0_61, %c0_62] : memref<1x512xf32, #tpu.memory_space<vmem>>, vector<1x512xf32>
    %c0_63 = arith.constant 0 : index
    %c0_64 = arith.constant 0 : index
    %175 = vector.load %arg2[%c0_63, %c0_64] : memref<1x512xf32, #tpu.memory_space<vmem>>, vector<1x512xf32>
    %176 = vector.broadcast %173 : vector<8x1xf32> to vector<8x512xf32>
    %177 = vector.broadcast %175 : vector<1x512xf32> to vector<8x512xf32>
    %178 = arith.mulf %176, %177 : vector<8x512xf32>
    %179 = vector.broadcast %174 : vector<1x512xf32> to vector<8x512xf32>
    %180 = arith.addf %179, %178 : vector<8x512xf32>
    %c0_65 = arith.constant 0 : index
    %c0_66 = arith.constant 0 : index
    %181 = vector.load %arg4[%c0_65, %c0_66] : memref<128x512xf32, #tpu.memory_space<vmem>>, vector<128x512xf32>
    %cst_67 = arith.constant dense<0.000000e+00> : vector<8x512xf32>
    %182 = tpu.matmul %169, %181, %cst_67 {dimension_numbers = #tpu.dot_dimension_numbers<[1], [0], [0], [1], [0, 0, 1, 1], [], []>} : vector<8x128xf32>, vector<128x512xf32>, vector<8x512xf32> -> vector<8x512xf32>
    %183 = arith.addf %180, %182 : vector<8x512xf32>
    %184 = vector.extract_strided_slice %183 {offsets = [0, 0], sizes = [8, 384], strides = [1, 1]} : vector<8x512xf32> to vector<8x384xf32>
    %185 = arith.negf %184 : vector<8x384xf32>
    %186 = math.exp %185 : vector<8x384xf32>
    %cst_68 = arith.constant 1.000000e+00 : f32
    %187 = vector.broadcast %cst_68 : f32 to vector<8x384xf32>
    %188 = arith.addf %187, %186 : vector<8x384xf32>
    %189 = arith.divf %187, %188 : vector<8x384xf32>
    %190 = vector.extract_strided_slice %189 {offsets = [0, 0], sizes = [8, 128], strides = [1, 1]} : vector<8x384xf32> to vector<8x128xf32>
    %191 = vector.extract_strided_slice %189 {offsets = [0, 128], sizes = [8, 128], strides = [1, 1]} : vector<8x384xf32> to vector<8x128xf32>
    %192 = vector.extract_strided_slice %189 {offsets = [0, 256], sizes = [8, 128], strides = [1, 1]} : vector<8x384xf32> to vector<8x128xf32>
    %193 = vector.extract_strided_slice %183 {offsets = [0, 384], sizes = [8, 128], strides = [1, 1]} : vector<8x512xf32> to vector<8x128xf32>
    %194 = math.tanh %193 : vector<8x128xf32>
    %195 = arith.mulf %191, %170 : vector<8x128xf32>
    %196 = arith.mulf %190, %194 : vector<8x128xf32>
    %197 = arith.addf %195, %196 : vector<8x128xf32>
    %198 = math.tanh %197 : vector<8x128xf32>
    %199 = arith.mulf %192, %198 : vector<8x128xf32>
    %200 = arith.addi %0, %c5_i32 : i32
    %c8_i32_69 = arith.constant 8 : i32
    %201 = arith.cmpi slt, %200, %c8_i32_69 : i32
    %202 = arith.select %201, %199, %169 : vector<8x128xf32>
    %203 = arith.select %201, %197, %170 : vector<8x128xf32>
    %c6_i32 = arith.constant 6 : i32
    %204 = arith.index_cast %c6_i32 : i32 to index
    %c0_70 = arith.constant 0 : index
    %c0_71 = arith.constant 0 : index
    %205 = vector.load %arg1[%204, %c0_70, %c0_71] : memref<8x8x1xf32, #tpu.memory_space<vmem>>, vector<1x8x1xf32>
    %206 = vector.shape_cast %205 : vector<1x8x1xf32> to vector<8x1xf32>
    %c0_72 = arith.constant 0 : index
    %c0_73 = arith.constant 0 : index
    %207 = vector.load %arg3[%c0_72, %c0_73] : memref<1x512xf32, #tpu.memory_space<vmem>>, vector<1x512xf32>
    %c0_74 = arith.constant 0 : index
    %c0_75 = arith.constant 0 : index
    %208 = vector.load %arg2[%c0_74, %c0_75] : memref<1x512xf32, #tpu.memory_space<vmem>>, vector<1x512xf32>
    %209 = vector.broadcast %206 : vector<8x1xf32> to vector<8x512xf32>
    %210 = vector.broadcast %208 : vector<1x512xf32> to vector<8x512xf32>
    %211 = arith.mulf %209, %210 : vector<8x512xf32>
    %212 = vector.broadcast %207 : vector<1x512xf32> to vector<8x512xf32>
    %213 = arith.addf %212, %211 : vector<8x512xf32>
    %c0_76 = arith.constant 0 : index
    %c0_77 = arith.constant 0 : index
    %214 = vector.load %arg4[%c0_76, %c0_77] : memref<128x512xf32, #tpu.memory_space<vmem>>, vector<128x512xf32>
    %cst_78 = arith.constant dense<0.000000e+00> : vector<8x512xf32>
    %215 = tpu.matmul %202, %214, %cst_78 {dimension_numbers = #tpu.dot_dimension_numbers<[1], [0], [0], [1], [0, 0, 1, 1], [], []>} : vector<8x128xf32>, vector<128x512xf32>, vector<8x512xf32> -> vector<8x512xf32>
    %216 = arith.addf %213, %215 : vector<8x512xf32>
    %217 = vector.extract_strided_slice %216 {offsets = [0, 0], sizes = [8, 384], strides = [1, 1]} : vector<8x512xf32> to vector<8x384xf32>
    %218 = arith.negf %217 : vector<8x384xf32>
    %219 = math.exp %218 : vector<8x384xf32>
    %cst_79 = arith.constant 1.000000e+00 : f32
    %220 = vector.broadcast %cst_79 : f32 to vector<8x384xf32>
    %221 = arith.addf %220, %219 : vector<8x384xf32>
    %222 = arith.divf %220, %221 : vector<8x384xf32>
    %223 = vector.extract_strided_slice %222 {offsets = [0, 0], sizes = [8, 128], strides = [1, 1]} : vector<8x384xf32> to vector<8x128xf32>
    %224 = vector.extract_strided_slice %222 {offsets = [0, 128], sizes = [8, 128], strides = [1, 1]} : vector<8x384xf32> to vector<8x128xf32>
    %225 = vector.extract_strided_slice %222 {offsets = [0, 256], sizes = [8, 128], strides = [1, 1]} : vector<8x384xf32> to vector<8x128xf32>
    %226 = vector.extract_strided_slice %216 {offsets = [0, 384], sizes = [8, 128], strides = [1, 1]} : vector<8x512xf32> to vector<8x128xf32>
    %227 = math.tanh %226 : vector<8x128xf32>
    %228 = arith.mulf %224, %203 : vector<8x128xf32>
    %229 = arith.mulf %223, %227 : vector<8x128xf32>
    %230 = arith.addf %228, %229 : vector<8x128xf32>
    %231 = math.tanh %230 : vector<8x128xf32>
    %232 = arith.mulf %225, %231 : vector<8x128xf32>
    %233 = arith.addi %0, %c6_i32 : i32
    %c8_i32_80 = arith.constant 8 : i32
    %234 = arith.cmpi slt, %233, %c8_i32_80 : i32
    %235 = arith.select %234, %232, %202 : vector<8x128xf32>
    %236 = arith.select %234, %230, %203 : vector<8x128xf32>
    %c7_i32 = arith.constant 7 : i32
    %237 = arith.index_cast %c7_i32 : i32 to index
    %c0_81 = arith.constant 0 : index
    %c0_82 = arith.constant 0 : index
    %238 = vector.load %arg1[%237, %c0_81, %c0_82] : memref<8x8x1xf32, #tpu.memory_space<vmem>>, vector<1x8x1xf32>
    %239 = vector.shape_cast %238 : vector<1x8x1xf32> to vector<8x1xf32>
    %c0_83 = arith.constant 0 : index
    %c0_84 = arith.constant 0 : index
    %240 = vector.load %arg3[%c0_83, %c0_84] : memref<1x512xf32, #tpu.memory_space<vmem>>, vector<1x512xf32>
    %c0_85 = arith.constant 0 : index
    %c0_86 = arith.constant 0 : index
    %241 = vector.load %arg2[%c0_85, %c0_86] : memref<1x512xf32, #tpu.memory_space<vmem>>, vector<1x512xf32>
    %242 = vector.broadcast %239 : vector<8x1xf32> to vector<8x512xf32>
    %243 = vector.broadcast %241 : vector<1x512xf32> to vector<8x512xf32>
    %244 = arith.mulf %242, %243 : vector<8x512xf32>
    %245 = vector.broadcast %240 : vector<1x512xf32> to vector<8x512xf32>
    %246 = arith.addf %245, %244 : vector<8x512xf32>
    %c0_87 = arith.constant 0 : index
    %c0_88 = arith.constant 0 : index
    %247 = vector.load %arg4[%c0_87, %c0_88] : memref<128x512xf32, #tpu.memory_space<vmem>>, vector<128x512xf32>
    %cst_89 = arith.constant dense<0.000000e+00> : vector<8x512xf32>
    %248 = tpu.matmul %235, %247, %cst_89 {dimension_numbers = #tpu.dot_dimension_numbers<[1], [0], [0], [1], [0, 0, 1, 1], [], []>} : vector<8x128xf32>, vector<128x512xf32>, vector<8x512xf32> -> vector<8x512xf32>
    %249 = arith.addf %246, %248 : vector<8x512xf32>
    %250 = vector.extract_strided_slice %249 {offsets = [0, 0], sizes = [8, 384], strides = [1, 1]} : vector<8x512xf32> to vector<8x384xf32>
    %251 = arith.negf %250 : vector<8x384xf32>
    %252 = math.exp %251 : vector<8x384xf32>
    %cst_90 = arith.constant 1.000000e+00 : f32
    %253 = vector.broadcast %cst_90 : f32 to vector<8x384xf32>
    %254 = arith.addf %253, %252 : vector<8x384xf32>
    %255 = arith.divf %253, %254 : vector<8x384xf32>
    %256 = vector.extract_strided_slice %255 {offsets = [0, 0], sizes = [8, 128], strides = [1, 1]} : vector<8x384xf32> to vector<8x128xf32>
    %257 = vector.extract_strided_slice %255 {offsets = [0, 128], sizes = [8, 128], strides = [1, 1]} : vector<8x384xf32> to vector<8x128xf32>
    %258 = vector.extract_strided_slice %255 {offsets = [0, 256], sizes = [8, 128], strides = [1, 1]} : vector<8x384xf32> to vector<8x128xf32>
    %259 = vector.extract_strided_slice %249 {offsets = [0, 384], sizes = [8, 128], strides = [1, 1]} : vector<8x512xf32> to vector<8x128xf32>
    %260 = math.tanh %259 : vector<8x128xf32>
    %261 = arith.mulf %257, %236 : vector<8x128xf32>
    %262 = arith.mulf %256, %260 : vector<8x128xf32>
    %263 = arith.addf %261, %262 : vector<8x128xf32>
    %264 = math.tanh %263 : vector<8x128xf32>
    %265 = arith.mulf %258, %264 : vector<8x128xf32>
    %266 = arith.addi %0, %c7_i32 : i32
    %c8_i32_91 = arith.constant 8 : i32
    %267 = arith.cmpi slt, %266, %c8_i32_91 : i32
    %268 = arith.select %267, %265, %235 : vector<8x128xf32>
    %269 = arith.select %267, %263, %236 : vector<8x128xf32>
    %c8_i32_92 = arith.constant 8 : i32
    %c0_93 = arith.constant 0 : index
    %c0_94 = arith.constant 0 : index
    %270 = vector.load %arg8[%c0_93, %c0_94] : memref<8x128xf32, #tpu.memory_space<vmem>>, vector<8x128xf32>
    tpu.vector_store %arg8[%c0_93, %c0_94], %268 {strides = array<i32>} : memref<8x128xf32, #tpu.memory_space<vmem>>, vector<8x128xf32>,
    %c0_95 = arith.constant 0 : index
    %c0_96 = arith.constant 0 : index
    %271 = vector.load %arg9[%c0_95, %c0_96] : memref<8x128xf32, #tpu.memory_space<vmem>>, vector<8x128xf32>
    tpu.vector_store %arg9[%c0_95, %c0_96], %269 {strides = array<i32>} : memref<8x128xf32, #tpu.memory_space<vmem>>, vector<8x128xf32>,
    %c0_i32_97 = arith.constant 0 : i32
    %272 = arith.cmpi eq, %arg0, %c0_i32_97 : i32
    %273 = arith.extui %272 : i1 to i32
    %c0_i32_98 = arith.constant 0 : i32
    %274 = arith.cmpi ne, %273, %c0_i32_98 : i32
    scf.if %274 {
      %c0_99 = arith.constant 0 : index
      %c0_100 = arith.constant 0 : index
      %c0_101 = arith.constant 0 : index
      %275 = vector.load %arg7[%c0_99, %c0_100, %c0_101] : memref<3x8x128xf32, #tpu.memory_space<vmem>>, vector<1x8x128xf32>
      %276 = vector.shape_cast %275 : vector<1x8x128xf32> to vector<8x128xf32>
      %277 = vector.shape_cast %268 : vector<8x128xf32> to vector<1x8x128xf32>
      tpu.vector_store %arg7[%c0_99, %c0_100, %c0_101], %277 {strides = array<i32>} : memref<3x8x128xf32, #tpu.memory_space<vmem>>, vector<1x8x128xf32>,
      %c1 = arith.constant 1 : index
      %c0_102 = arith.constant 0 : index
      %c0_103 = arith.constant 0 : index
      %278 = vector.load %arg7[%c1, %c0_102, %c0_103] : memref<3x8x128xf32, #tpu.memory_space<vmem>>, vector<1x8x128xf32>
      %279 = vector.shape_cast %278 : vector<1x8x128xf32> to vector<8x128xf32>
      %280 = vector.shape_cast %269 : vector<8x128xf32> to vector<1x8x128xf32>
      tpu.vector_store %arg7[%c1, %c0_102, %c0_103], %280 {strides = array<i32>} : memref<3x8x128xf32, #tpu.memory_space<vmem>>, vector<1x8x128xf32>,
      %cst_104 = arith.constant 0.000000e+00 : f32
      %281 = vector.broadcast %cst_104 : f32 to vector<8x128xf32>
      %282 = arith.maximumf %268, %281 : vector<8x128xf32>
      %c0_105 = arith.constant 0 : index
      %c0_106 = arith.constant 0 : index
      %283 = vector.load %arg5[%c0_105, %c0_106] : memref<128x128xf32, #tpu.memory_space<vmem>>, vector<128x128xf32>
      %cst_107 = arith.constant dense<0.000000e+00> : vector<8x128xf32>
      %284 = tpu.matmul %282, %283, %cst_107 {dimension_numbers = #tpu.dot_dimension_numbers<[1], [0], [0], [1], [0, 0, 1, 1], [], []>} : vector<8x128xf32>, vector<128x128xf32>, vector<8x128xf32> -> vector<8x128xf32>
      %c0_108 = arith.constant 0 : index
      %c0_109 = arith.constant 0 : index
      %285 = vector.load %arg6[%c0_108, %c0_109] : memref<1x128xf32, #tpu.memory_space<vmem>>, vector<1x128xf32>
      %286 = vector.broadcast %285 : vector<1x128xf32> to vector<8x128xf32>
      %287 = arith.addf %284, %286 : vector<8x128xf32>
      %c2 = arith.constant 2 : index
      %c0_110 = arith.constant 0 : index
      %c0_111 = arith.constant 0 : index
      %288 = vector.load %arg7[%c2, %c0_110, %c0_111] : memref<3x8x128xf32, #tpu.memory_space<vmem>>, vector<1x8x128xf32>
      %289 = vector.shape_cast %288 : vector<1x8x128xf32> to vector<8x128xf32>
      %290 = vector.shape_cast %287 : vector<8x128xf32> to vector<1x8x128xf32>
      tpu.vector_store %arg7[%c2, %c0_110, %c0_111], %290 {strides = array<i32>} : memref<3x8x128xf32, #tpu.memory_space<vmem>>, vector<1x8x128xf32>,
    } else {
    }
    return
  }
  func.func @transform_0(%arg0: i32) -> (i32, i32, i32) {
    %c0_i32 = arith.constant 0 : i32
    %c0_i32_0 = arith.constant 0 : i32
    %c0_i32_1 = arith.constant 0 : i32
    return %arg0, %c0_i32, %c0_i32_0 : i32, i32, i32
  }
  func.func @transform_1(%arg0: i32) -> (i32, i32) {
    %c0_i32 = arith.constant 0 : i32
    %c0_i32_0 = arith.constant 0 : i32
    %c0_i32_1 = arith.constant 0 : i32
    return %c0_i32, %c0_i32_0 : i32, i32
  }
  func.func @transform_2(%arg0: i32) -> (i32, i32) {
    %c0_i32 = arith.constant 0 : i32
    %c0_i32_0 = arith.constant 0 : i32
    %c0_i32_1 = arith.constant 0 : i32
    return %c0_i32, %c0_i32_0 : i32, i32
  }
  func.func @transform_3(%arg0: i32) -> (i32, i32) {
    %c0_i32 = arith.constant 0 : i32
    %c0_i32_0 = arith.constant 0 : i32
    %c0_i32_1 = arith.constant 0 : i32
    return %c0_i32, %c0_i32_0 : i32, i32
  }
  func.func @transform_4(%arg0: i32) -> (i32, i32) {
    %c0_i32 = arith.constant 0 : i32
    %c0_i32_0 = arith.constant 0 : i32
    %c0_i32_1 = arith.constant 0 : i32
    return %c0_i32, %c0_i32_0 : i32, i32
  }
  func.func @transform_5(%arg0: i32) -> (i32, i32) {
    %c0_i32 = arith.constant 0 : i32
    %c0_i32_0 = arith.constant 0 : i32
    %c0_i32_1 = arith.constant 0 : i32
    return %c0_i32, %c0_i32_0 : i32, i32
  }
  func.func @transform_6(%arg0: i32) -> (i32, i32, i32) {
    %c0_i32 = arith.constant 0 : i32
    %c0_i32_0 = arith.constant 0 : i32
    %c0_i32_1 = arith.constant 0 : i32
    %c0_i32_2 = arith.constant 0 : i32
    return %c0_i32, %c0_i32_0, %c0_i32_1 : i32, i32, i32
  }
}

</mosaic_0001>

<bundles_post_ra>
// kernel: imslstm_forward.1
= control target key start
LH: loop header
LB: loop body
LE: loop exit
PB: predicated region body
PF: predicated region fallthrough
CT: control target
= control target key end

     0   :  { %v2538_v3 = vmov 0.0   ;;  %v2539_v8 = vmov 0   ;;  %vm2541_vm0 = vmmov 0   ;;  %s3306_s3 = inlined_call_operand.vmem [shape: f32[128,512], index: 3, kind: input, shape index: {}]   ;;  %s3307_s0 = inlined_call_operand.vmem [shape: f32[8,8,1], index: 0, kind: input, shape index: {}]   ;;  %s3308_s1 = inlined_call_operand.vmem [shape: f32[1,512], index: 1, kind: input, shape index: {}]   ;;  %s3309_s2 = inlined_call_operand.vmem [shape: f32[1,512], index: 2, kind: input, shape index: {}]   ;;  %s3310_s4 = inlined_call_operand.vmem [shape: f32[128,128], index: 4, kind: input, shape index: {}]   ;;  %s3311_s6 = inlined_call_operand.vmem [shape: f32[3,8,128], index: 6, kind: output, shape index: {}]   ;;  %s3312_s5 = inlined_call_operand.vmem [shape: f32[1,128], index: 5, kind: input, shape index: {}]  }
   0x1   :  { %v91_v0 = vld [vmem:[%s3306_s3 + $0x8] sm:$0xff]  ;;  %v93_v2 = vld [vmem:[%s3306_s3 + $0x18] sm:$0xff]  ;;  %218 = vmatprep.mubr.f32.mxu0 %v2538_v3  ;;  %289 = vmatprep.mubr.f32.mxu1 %v2538_v3  ;;  %v90_v6 = vld [vmem:[%s3306_s3] sm:$0xff] }
   0x2   :  { %v95_v1 = vld [vmem:[%s3306_s3 + $0x28] sm:$0xff]  ;;  %v97_v5 = vld [vmem:[%s3306_s3 + $0x38] sm:$0xff]  ;;  %v94_v7 = vld [vmem:[%s3306_s3 + $0x20] sm:$0xff]  ;;  %2408 = vset.pattern.permute.xlu0 %v2539_v8  ;;  %2409 = vset.pattern.permute.xlu1 %v2539_v8 }
   0x3   :  { %v2588_v4 = vpack.c.bf16 %v95_v1, %v91_v0  ;;  %v2599_v9 = vpack.c.bf16 %v97_v5, %v93_v2  ;;  %v2601_v10 = vpack.c.bf16 %v94_v7, %v90_v6  ;;  %v92_v11 = vld [vmem:[%s3306_s3 + $0x10] sm:$0xff]  ;;  %v99_v13 = vld [vmem:[%s3306_s3 + $0x48] sm:$0xff]  ;;  %v101_v16 = vld [vmem:[%s3306_s3 + $0x58] sm:$0xff] }
   0x4   :  { %v96_v12 = vld [vmem:[%s3306_s3 + $0x30] sm:$0xff]  ;;  %v103_v15 = vld [vmem:[%s3306_s3 + $0x68] sm:$0xff]  ;;  %v105_v17 = vld [vmem:[%s3306_s3 + $0x78] sm:$0xff] }
   0x5   :  { %1869 = vmatprep.subr.bf16.mxu0 %v2588_v4  ;;  %v2613_v14 = vpack.c.bf16 %v96_v12, %v92_v11  ;;  %1901 = vmatprep.subr.bf16.mxu1 %v2599_v9  ;;  %v2626_v18 = vpack.c.bf16 %v103_v15, %v99_v13  ;;  %v2628_v19 = vpack.c.bf16 %v105_v17, %v101_v16  ;;  %v98_v20 = vld [vmem:[%s3306_s3 + $0x40] sm:$0xff]  ;;  %v100_v22 = vld [vmem:[%s3306_s3 + $0x50] sm:$0xff]  ;;  %v107_v25 = vld [vmem:[%s3306_s3 + $0x88] sm:$0xff] }
   0x6   :  { %1871 = vmatpush1.bf16.msra.mxu0 %v2601_v10  ;;  %v102_v21 = vld [vmem:[%s3306_s3 + $0x60] sm:$0xff]  ;;  %v104_v24 = vld [vmem:[%s3306_s3 + $0x70] sm:$0xff]  ;;  %v111_v26 = vld [vmem:[%s3306_s3 + $0xa8] sm:$0xff] }
   0x7   :  { %1903 = vmatpush1.bf16.msra.mxu1 %v2613_v14  ;;  %v2640_v23 = vpack.c.bf16 %v102_v21, %v98_v20  ;;  %1873 = vmatprep.subr.bf16.mxu0 %v2626_v18  ;;  %v2653_v27 = vpack.c.bf16 %v104_v24, %v100_v22  ;;  %v2655_v28 = vpack.c.bf16 %v111_v26, %v107_v25  ;;  %v109_v29 = vld [vmem:[%s3306_s3 + $0x98] sm:$0xff]  ;;  %v106_v31 = vld [vmem:[%s3306_s3 + $0x80] sm:$0xff]  ;;  %v108_v34 = vld [vmem:[%s3306_s3 + $0x90] sm:$0xff] }
   0x8   :  { %1905 = vmatprep.subr.bf16.mxu1 %v2628_v19  ;;  %v113_v30 = vld [vmem:[%s3306_s3 + $0xb8] sm:$0xff]  ;;  %v110_v33 = vld [vmem:[%s3306_s3 + $0xa0] sm:$0xff]  ;;  %v112_v35 = vld [vmem:[%s3306_s3 + $0xb0] sm:$0xff] }
   0x9   :  { %v2666_v32 = vpack.c.bf16 %v113_v30, %v109_v29  ;;  %v2678_v36 = vpack.c.bf16 %v110_v33, %v106_v31  ;;  %v115_v37 = vld [vmem:[%s3306_s3 + $0xc8] sm:$0xff]  ;;  %v117_v39 = vld [vmem:[%s3306_s3 + $0xd8] sm:$0xff]  ;;  %v2691_v40 = vpack.c.bf16 %v112_v35, %v108_v34  ;;  %v114_v43 = vld [vmem:[%s3306_s3 + $0xc0] sm:$0xff] }
   0xa   :  { %1875 = vmatpush1.bf16.msra.mxu0 %v2640_v23  ;;  %v119_v38 = vld [vmem:[%s3306_s3 + $0xe8] sm:$0xff]  ;;  %v121_v42 = vld [vmem:[%s3306_s3 + $0xf8] sm:$0xff]  ;;  %v118_v44 = vld [vmem:[%s3306_s3 + $0xe0] sm:$0xff] }
   0xb   :  { %1907 = vmatpush1.bf16.msra.mxu1 %v2653_v27  ;;  %1877 = vmatprep.subr.bf16.mxu0 %v2655_v28  ;;  %v2693_v41 = vpack.c.bf16 %v119_v38, %v115_v37  ;;  %v2705_v45 = vpack.c.bf16 %v121_v42, %v117_v39  ;;  %v116_v46 = vld [vmem:[%s3306_s3 + $0xd0] sm:$0xff]  ;;  %v123_v48 = vld [vmem:[%s3306_s3 + $0x108] sm:$0xff]  ;;  %v125_v50 = vld [vmem:[%s3306_s3 + $0x118] sm:$0xff]  ;;  %v2726_v52 = vpack.c.bf16 %v118_v44, %v114_v43 }
   0xc   :  { %1909 = vmatprep.subr.bf16.mxu1 %v2666_v32  ;;  %v120_v47 = vld [vmem:[%s3306_s3 + $0xf0] sm:$0xff]  ;;  %v127_v49 = vld [vmem:[%s3306_s3 + $0x128] sm:$0xff]  ;;  %v129_v51 = vld [vmem:[%s3306_s3 + $0x138] sm:$0xff] }
   0xd   :  { %v2730_v53 = vpack.c.bf16 %v120_v47, %v116_v46  ;;  %v2732_v54 = vpack.c.bf16 %v127_v49, %v123_v48  ;;  %v122_v55 = vld [vmem:[%s3306_s3 + $0x100] sm:$0xff]  ;;  %v124_v57 = vld [vmem:[%s3306_s3 + $0x110] sm:$0xff]  ;;  %v2744_v58 = vpack.c.bf16 %v129_v51, %v125_v50  ;;  %v131_v60 = vld [vmem:[%s3306_s3 + $0x148] sm:$0xff] }
   0xe   :  { %1879 = vmatpush1.bf16.msra.mxu0 %v2678_v36  ;;  %v126_v56 = vld [vmem:[%s3306_s3 + $0x120] sm:$0xff]  ;;  %v128_v59 = vld [vmem:[%s3306_s3 + $0x130] sm:$0xff]  ;;  %v135_v61 = vld [vmem:[%s3306_s3 + $0x168] sm:$0xff] }
   0xf   :  { %1911 = vmatpush1.bf16.msra.mxu1 %v2691_v40  ;;  %1881 = vmatprep.subr.bf16.mxu0 %v2693_v41  ;;  %v133_v62 = vld [vmem:[%s3306_s3 + $0x158] sm:$0xff]  ;;  %v2762_v0 = vpack.c.bf16 %v126_v56, %v122_v55  ;;  %v2766_v1 = vpack.c.bf16 %v128_v59, %v124_v57  ;;  %v2768_v2 = vpack.c.bf16 %v135_v61, %v131_v60  ;;  %v130_v5 = vld [vmem:[%s3306_s3 + $0x140] sm:$0xff]  ;;  %v132_v7 = vld [vmem:[%s3306_s3 + $0x150] sm:$0xff]  ;;  %v41_v56 = vlaneseq }
  0x10   :  { %1913 = vmatprep.subr.bf16.mxu1 %v2705_v45  ;;  %v137_v63 = vld [vmem:[%s3306_s3 + $0x178] sm:$0xff]  ;;  %v134_v6 = vld [vmem:[%s3306_s3 + $0x160] sm:$0xff]  ;;  %v136_v11 = vld [vmem:[%s3306_s3 + $0x170] sm:$0xff] }
  0x11   :  { %v2780_v8 = vpack.c.bf16 %v137_v63, %v133_v62  ;;  %v139_v12 = vld [vmem:[%s3306_s3 + $0x188] sm:$0xff]  ;;  %v141_v15 = vld [vmem:[%s3306_s3 + $0x198] sm:$0xff]  ;;  %v2798_v17 = vpack.c.bf16 %v134_v6, %v130_v5  ;;  %v138_v20 = vld [vmem:[%s3306_s3 + $0x180] sm:$0xff]  ;;  %v2805_v21 = vpack.c.bf16 %v136_v11, %v132_v7  ;;  %v42_v57 = vshrl.u32 %v41_v56, 7 }
  0x12   :  { %1883 = vmatpush1.bf16.msra.mxu0 %v2726_v52  ;;  %v143_v13 = vld [vmem:[%s3306_s3 + $0x1a8] sm:$0xff]  ;;  %v145_v16 = vld [vmem:[%s3306_s3 + $0x1b8] sm:$0xff]  ;;  %v142_v24 = vld [vmem:[%s3306_s3 + $0x1a0] sm:$0xff] }
  0x13   :  { %1915 = vmatpush1.bf16.msra.mxu1 %v2730_v53  ;;  %1885 = vmatprep.subr.bf16.mxu0 %v2732_v54  ;;  %v2807_v22 = vpack.c.bf16 %v143_v13, %v139_v12  ;;  %v140_v25 = vld [vmem:[%s3306_s3 + $0x190] sm:$0xff]  ;;  %v32_v26 = vld [vmem:[%s3307_s0] sm:$0xff]  ;;  %v2819_v29 = vpack.c.bf16 %v145_v16, %v141_v15  ;;  %v147_v31 = vld [vmem:[%s3306_s3 + $0x1c8] sm:$0xff]  ;;  %v2840_v38 = vpack.c.bf16 %v142_v24, %v138_v20  ;;  %v43_v59 = vsub.s32 0, %v42_v57 }
  0x14   :  { %1917 = vmatprep.subr.bf16.mxu1 %v2744_v58  ;;  %v144_v30 = vld [vmem:[%s3306_s3 + $0x1b0] sm:$0xff]  ;;  %v151_v33 = vld [vmem:[%s3306_s3 + $0x1e8] sm:$0xff]  ;;  %37 = vperm.xlu0 %2408, %v32_v26   ;;  %v149_v34 = vld [vmem:[%s3306_s3 + $0x1d8] sm:$0xff]  ;;  %v47_v61 = vsub.s32 1, %v42_v57  ;;  %v51_v7 = vsub.s32 2, %v42_v57  ;;  %v55_v20 = vsub.s32 3, %v42_v57 }
  0x15   :  { %v153_v35 = vld [vmem:[%s3306_s3 + $0x1f8] sm:$0xff]  ;;  %v1785_v37 = vld [vmem:[%s3307_s0 + $0x8] sm:$0xff]  ;;  %v2844_v39 = vpack.c.bf16 %v144_v30, %v140_v25  ;;  %v2846_v42 = vpack.c.bf16 %v151_v33, %v147_v31  ;;  %v146_v43 = vld [vmem:[%s3306_s3 + $0x1c0] sm:$0xff] }
  0x16   :  { %1887 = vmatpush1.bf16.msra.mxu0 %v2762_v0  ;;  %v150_v44 = vld [vmem:[%s3306_s3 + $0x1e0] sm:$0xff]  ;;  %v2855_v46 = vpack.c.bf16 %v153_v35, %v149_v34  ;;  %v148_v47 = vld [vmem:[%s3306_s3 + $0x1d0] sm:$0xff] }
  0x17   :  { %1919 = vmatpush1.bf16.msra.mxu1 %v2766_v1  ;;  %1889 = vmatprep.subr.bf16.mxu0 %v2768_v2  ;;  %v152_v48 = vld [vmem:[%s3306_s3 + $0x1f0] sm:$0xff]  ;;  %v1797_v49 = vld [vmem:[%s3307_s0 + $0x20] sm:$0xff]  ;;  %v2867_v50 = vpack.c.bf16 %v150_v44, %v146_v43 }
  0x18   :  { %1921 = vmatprep.subr.bf16.mxu1 %v2780_v8  ;;  %334 = vperm.xlu0 %2408, %v1785_v37   ;;  %v2871_v51 = vpack.c.bf16 %v152_v48, %v148_v47  ;;  %v1805_v55 = vld [vmem:[%s3307_s0 + $0x30] sm:$0xff]  ;;  %v34_v60 = vld [vmem:[%s3308_s1] sm:$0xf] }
  0x19   :  { %v2920_v62 = vrot.slane %v34_v60, %v43_v59  ;;  %v2922_v63 = vrot.slane %v34_v60, %v47_v61  ;;  %v33_v5 = vld [vmem:[%s3309_s2] sm:$0xf]  ;;  %v2933_v16 = vrot.slane %v34_v60, %v51_v7  ;;  %v2940_v33 = vrot.slane %v34_v60, %v55_v20 }
  0x1a   :  { %1891 = vmatpush1.bf16.msra.mxu0 %v2798_v17  ;;  %v2928_v12 = vrot.slane %v33_v5, %v43_v59  ;;  %v2931_v15 = vrot.slane %v33_v5, %v47_v61  ;;  %v2938_v31 = vrot.slane %v33_v5, %v51_v7  ;;  %v2944_v56 = vrot.slane %v33_v5, %v55_v20 }
  0x1b   :  { %1923 = vmatpush1.bf16.msra.mxu1 %v2805_v21  ;;  %1893 = vmatprep.subr.bf16.mxu0 %v2807_v22 }
  0x1c   :  { %1925 = vmatprep.subr.bf16.mxu1 %v2819_v29  ;;  %910 = vperm.xlu0 %2408, %v1797_v49  }
  0x1e   :  { %1895 = vmatpush1.bf16.msra.mxu0 %v2840_v38 }
  0x1f   :  { %1927 = vmatpush1.bf16.msra.mxu1 %v2844_v39  ;;  %1897 = vmatprep.subr.bf16.mxu0 %v2846_v42 }
  0x20   :  { %1929 = vmatprep.subr.bf16.mxu1 %v2855_v46  ;;  %1294 = vperm.xlu0 %2408, %v1805_v55  }
  0x22   :  { %1899 = vmatpush1.bf16.msra.mxu0 %v2867_v50 }
  0x23   :  { %1931 = vmatpush1.bf16.msra.mxu1 %v2871_v51  ;;  %1933 = vmatprep.subr.bf16.mxu0 %v2588_v4 }
  0x24   :  { %1965 = vmatprep.subr.bf16.mxu1 %v2599_v9 }
  0x25   :  { %219 = vmatmul.mubr.f32.vlgmr.msra.gmra.mrb[0].mxu0 %v2538_v3 }
  0x26   :  { %290 = vmatmul.mubr.f32.vlgmr.msra.gmra.mrb[0].mxu1 %v2538_v3  ;;  %1935 = vmatpush1.bf16.msra.mxu0 %v2601_v10 }
  0x27   :  { %1967 = vmatpush1.bf16.msra.mxu1 %v2613_v14  ;;  %1937 = vmatprep.subr.bf16.mxu0 %v2626_v18 }
  0x28   :  { %1969 = vmatprep.subr.bf16.mxu1 %v2628_v19  ;;  %409 = vmatprep.mubr.f32.mxu0 %v2538_v3 }
  0x29   :  { %480 = vmatprep.mubr.f32.mxu1 %v2538_v3 }
  0x2a   :  { %1939 = vmatpush1.bf16.msra.mxu0 %v2640_v23 }
  0x2b   :  { %1971 = vmatpush1.bf16.msra.mxu1 %v2653_v27  ;;  %1941 = vmatprep.subr.bf16.mxu0 %v2655_v28 }
  0x2c   :  { %1973 = vmatprep.subr.bf16.mxu1 %v2666_v32 }
  0x2e   :  { %1943 = vmatpush1.bf16.msra.mxu0 %v2678_v36 }
  0x2f   :  { %1975 = vmatpush1.bf16.msra.mxu1 %v2691_v40  ;;  %1945 = vmatprep.subr.bf16.mxu0 %v2693_v41 }
  0x30   :  { %1977 = vmatprep.subr.bf16.mxu1 %v2705_v45 }
  0x32   :  { %1947 = vmatpush1.bf16.msra.mxu0 %v2726_v52 }
  0x33   :  { %1979 = vmatpush1.bf16.msra.mxu1 %v2730_v53  ;;  %1949 = vmatprep.subr.bf16.mxu0 %v2732_v54 }
  0x34   :  { %1981 = vmatprep.subr.bf16.mxu1 %v2744_v58 }
  0x36   :  { %1951 = vmatpush1.bf16.msra.mxu0 %v2762_v0 }
  0x37   :  { %1983 = vmatpush1.bf16.msra.mxu1 %v2766_v1  ;;  %1953 = vmatprep.subr.bf16.mxu0 %v2768_v2 }
  0x38   :  { %1985 = vmatprep.subr.bf16.mxu1 %v2780_v8 }
  0x3a   :  { %1955 = vmatpush1.bf16.msra.mxu0 %v2798_v17 }
  0x3b   :  { %1987 = vmatpush1.bf16.msra.mxu1 %v2805_v21  ;;  %1957 = vmatprep.subr.bf16.mxu0 %v2807_v22 }
  0x3c   :  { %1989 = vmatprep.subr.bf16.mxu1 %v2819_v29 }
  0x3e   :  { %1959 = vmatpush1.bf16.msra.mxu0 %v2840_v38 }
  0x3f   :  { %1991 = vmatpush1.bf16.msra.mxu1 %v2844_v39  ;;  %1961 = vmatprep.subr.bf16.mxu0 %v2846_v42 }
  0x40   :  { %1993 = vmatprep.subr.bf16.mxu1 %v2855_v46 }
  0x42   :  { %1963 = vmatpush1.bf16.msra.mxu0 %v2867_v50 }
  0x43   :  { %1995 = vmatpush1.bf16.msra.mxu1 %v2871_v51  ;;  %1997 = vmatprep.subr.bf16.mxu0 %v2588_v4 }
  0x44   :  { %2029 = vmatprep.subr.bf16.mxu1 %v2599_v9 }
  0x93   :  { %v38_v6 = vpop.permute.xlu0 %37 }
  0x94   :  { %v61_v11 = vmul.f32 %v2920_v62, %v38_v6  ;;  %v62_v13 = vmul.f32 %v2922_v63, %v38_v6  ;;  %v63_v30 = vmul.f32 %v2933_v16, %v38_v6  ;;  %v64_v55 = vmul.f32 %v2940_v33, %v38_v6 }
  0x96   :  { %v86_v24 = vadd.f32 %v2928_v12, %v61_v11  ;;  %v87_v25 = vadd.f32 %v2931_v15, %v62_v13  ;;  %v88_v48 = vadd.f32 %v2938_v31, %v63_v30  ;;  %v89_v59 = vadd.f32 %v2944_v56, %v64_v55  ;;  %v1809_v55 = vld [vmem:[%s3307_s0 + $0x38] sm:$0xff] }
  0xf8   :  { %v220_v26 = vpop.f32.mrb[0].mxu0 }
  0xf9   :  { %v296_v34 = vadd.f32 %v220_v26, %v86_v24  ;;  %v291_v35 = vpop.f32.mrb[0].mxu1  ;;  %v222_v37 = vpop.f32.mrb[1].mxu0 }
  0xfa   :  { %v297_v43 = vadd.f32 %v222_v37, %v87_v25  ;;  %v293_v44 = vpop.f32.mrb[1].mxu1  ;;  %v298_v57 = vadd.f32 %v291_v35, %v88_v48  ;;  %v1793_v48 = vld [vmem:[%s3307_s0 + $0x18] sm:$0xff] }
  0xfb   :  { %v1782_v47 = vmul.f32 -1.442695, %v296_v34  ;;  %v299_v61 = vadd.f32 %v293_v44, %v89_v59 }
  0xfc   :  { %v1783_v49 = vmul.f32 -1.442695, %v297_v43  ;;  %v1784_v60 = vmul.f32 -1.442695, %v298_v57  ;;  %v335_v57 = vpop.permute.xlu0 %334 }
  0xfd   :  { %2410 = vpow2.f32 %v1782_v47  ;;  %v1789_v47 = vld [vmem:[%s3307_s0 + $0x10] sm:$0xff]  ;;  %v337_v59 = vmul.f32 %v335_v57, %v2920_v62 }
  0xfe   :  { %2412 = vpow2.f32 %v1783_v49  ;;  %526 = vperm.xlu1 %2409, %v1789_v47   ;;  %v1801_v49 = vld [vmem:[%s3307_s0 + $0x28] sm:$0xff] }
  0xff   :  { %2414 = vpow2.f32 %v1784_v60  ;;  %v338_v60 = vmul.f32 %v335_v57, %v2922_v63 }
 0x100   :  { %2416 = vtanh.f32 %v299_v61  ;;  %v341_v61 = vadd.f32 %v337_v59, %v2928_v12 }
 0x102   :  { %718 = vperm.xlu1 %2409, %v1793_v48  }
 0x106   :  { %1102 = vperm.xlu1 %2409, %v1801_v49  }
 0x107   :  { %v2411_v7 = vpop.eup %2410 }
 0x108   :  { %v309_v11 = vadd.f32 1.0, %v2411_v7  ;;  %v2413_v13 = vpop.eup %2412 }
 0x109   :  { %v310_v24 = vadd.f32 1.0, %v2413_v13  ;;  %v2415_v25 = vpop.eup %2414  ;;  %v342_v13 = vadd.f32 %v338_v60, %v2931_v15 }
 0x10a   :  { %2418 = vrcp.f32 %v309_v11  ;;  %v2417_v26 = vpop.eup %2416  ;;  %v311_v20 = vadd.f32 1.0, %v2415_v25  ;;  %1486 = vperm.xlu1 %2409, %v1809_v55  }
 0x10b   :  { %2420 = vrcp.f32 %v310_v24 }
 0x10c   :  { %2422 = vrcp.f32 %v311_v20 }
 0x114   :  { %v2419_v30 = vpop.eup %2418 }
 0x115   :  { %v320_v6 = vmul.f32 %v2419_v30, %v2417_v26  ;;  %v2421_v5 = vpop.eup %2420 }
 0x116   :  { %v319_v34 = vmul.f32 0.0, %v2421_v5  ;;  %v2423_v37 = vpop.eup %2422  ;;  %v339_v5 = vmul.f32 %v335_v57, %v2933_v16 }
 0x118   :  { %v2947_v35 = vadd.f32 %v320_v6, %v319_v34  ;;  %v340_v34 = vmul.f32 %v335_v57, %v2940_v33 }
 0x11a   :  { %2424 = vtanh.f32 %v2947_v35 }
 0x124   :  { %v2425_v43 = vpop.eup %2424 }
 0x125   :  { %v323_v44 = vmul.f32 %v2425_v43, %v2423_v37  ;;  %v343_v37 = vadd.f32 %v339_v5, %v2938_v31 }
 0x127   :  { %410 = vmatmul.mubr.f32.vlgmr.msra.gmra.mrb[2].mxu0 %v323_v44  ;;  %481 = vmatmul.mubr.f32.vlgmr.msra.gmra.mrb[2].mxu1 %v323_v44  ;;  %v344_v44 = vadd.f32 %v340_v34, %v2944_v56 }
 0x128   :  { %1999 = vmatpush1.bf16.msra.mxu0 %v2601_v10  ;;  %2031 = vmatpush1.bf16.msra.mxu1 %v2613_v14 }
 0x129   :  { %2001 = vmatprep.subr.bf16.mxu0 %v2626_v18  ;;  %2033 = vmatprep.subr.bf16.mxu1 %v2628_v19 }
 0x12a   :  { %601 = vmatprep.mubr.f32.mxu0 %v2538_v3  ;;  %672 = vmatprep.mubr.f32.mxu1 %v2538_v3 }
 0x12c   :  { %2003 = vmatpush1.bf16.msra.mxu0 %v2640_v23  ;;  %2035 = vmatpush1.bf16.msra.mxu1 %v2653_v27 }
 0x12d   :  { %2005 = vmatprep.subr.bf16.mxu0 %v2655_v28  ;;  %2037 = vmatprep.subr.bf16.mxu1 %v2666_v32 }
 0x130   :  { %2007 = vmatpush1.bf16.msra.mxu0 %v2678_v36  ;;  %2039 = vmatpush1.bf16.msra.mxu1 %v2691_v40 }
 0x131   :  { %2009 = vmatprep.subr.bf16.mxu0 %v2693_v41  ;;  %2041 = vmatprep.subr.bf16.mxu1 %v2705_v45 }
 0x134   :  { %2011 = vmatpush1.bf16.msra.mxu0 %v2726_v52  ;;  %2043 = vmatpush1.bf16.msra.mxu1 %v2730_v53 }
 0x135   :  { %2013 = vmatprep.subr.bf16.mxu0 %v2732_v54  ;;  %2045 = vmatprep.subr.bf16.mxu1 %v2744_v58 }
 0x138   :  { %2015 = vmatpush1.bf16.msra.mxu0 %v2762_v0  ;;  %2047 = vmatpush1.bf16.msra.mxu1 %v2766_v1 }
 0x139   :  { %2017 = vmatprep.subr.bf16.mxu0 %v2768_v2  ;;  %2049 = vmatprep.subr.bf16.mxu1 %v2780_v8 }
 0x13c   :  { %2019 = vmatpush1.bf16.msra.mxu0 %v2798_v17  ;;  %2051 = vmatpush1.bf16.msra.mxu1 %v2805_v21 }
 0x13d   :  { %2021 = vmatprep.subr.bf16.mxu0 %v2807_v22  ;;  %2053 = vmatprep.subr.bf16.mxu1 %v2819_v29 }
 0x140   :  { %2023 = vmatpush1.bf16.msra.mxu0 %v2840_v38  ;;  %2055 = vmatpush1.bf16.msra.mxu1 %v2844_v39 }
 0x141   :  { %2025 = vmatprep.subr.bf16.mxu0 %v2846_v42  ;;  %2057 = vmatprep.subr.bf16.mxu1 %v2855_v46 }
 0x144   :  { %2027 = vmatpush1.bf16.msra.mxu0 %v2867_v50  ;;  %2059 = vmatpush1.bf16.msra.mxu1 %v2871_v51 }
 0x145   :  { %2061 = vmatprep.subr.bf16.mxu0 %v2588_v4  ;;  %2093 = vmatprep.subr.bf16.mxu1 %v2599_v9 }
 0x1fa   :  { %v411_v7 = vpop.f32.mrb[2].mxu0  ;;  %v482_v11 = vpop.f32.mrb[2].mxu1 }
 0x1fb   :  { %v487_v24 = vadd.f32 %v411_v7, %v341_v61  ;;  %v413_v25 = vpop.f32.mrb[3].mxu0  ;;  %v484_v26 = vpop.f32.mrb[3].mxu1  ;;  %v489_v43 = vadd.f32 %v482_v11, %v343_v37 }
 0x1fc   :  { %v488_v30 = vadd.f32 %v413_v25, %v342_v13  ;;  %v490_v47 = vadd.f32 %v484_v26, %v344_v44 }
 0x1fd   :  { %v1786_v6 = vmul.f32 -1.442695, %v487_v24  ;;  %v1788_v48 = vmul.f32 -1.442695, %v489_v43 }
 0x1fe   :  { %v1787_v20 = vmul.f32 -1.442695, %v488_v30 }
 0x1ff   :  { %2426 = vpow2.f32 %v1786_v6 }
 0x200   :  { %2428 = vpow2.f32 %v1787_v20 }
 0x201   :  { %2430 = vtanh.f32 %v490_v47 }
 0x202   :  { %2432 = vpow2.f32 %v1788_v48 }
 0x209   :  { %v2427_v49 = vpop.eup %2426 }
 0x20a   :  { %v500_v55 = vadd.f32 1.0, %v2427_v49  ;;  %v2429_v59 = vpop.eup %2428 }
 0x20b   :  { %v501_v60 = vadd.f32 1.0, %v2429_v59  ;;  %v2431_v61 = vpop.eup %2430 }
 0x20c   :  { %2434 = vrcp.f32 %v500_v55  ;;  %v2433_v7 = vpop.eup %2432 }
 0x20d   :  { %2436 = vrcp.f32 %v501_v60  ;;  %v502_v25 = vadd.f32 1.0, %v2433_v7 }
 0x20f   :  { %2438 = vrcp.f32 %v502_v25 }
 0x216   :  { %v2435_v13 = vpop.eup %2434 }
 0x217   :  { %v511_v57 = vmul.f32 %v2435_v13, %v2431_v61  ;;  %v2437_v24 = vpop.eup %2436 }
 0x218   :  { %v510_v11 = vmul.f32 %v2437_v24, %v2947_v35  ;;  %v527_v35 = vpop.permute.xlu1 %526 }
 0x219   :  { %v2439_v26 = vpop.eup %2438  ;;  %v529_v20 = vmul.f32 %v527_v35, %v2920_v62  ;;  %v530_v34 = vmul.f32 %v527_v35, %v2922_v63  ;;  %v531_v49 = vmul.f32 %v527_v35, %v2933_v16  ;;  %v532_v13 = vmul.f32 %v527_v35, %v2940_v33 }
 0x21a   :  { %v3005_v30 = vadd.f32 %v511_v57, %v510_v11 }
 0x21b   :  { %v533_v37 = vadd.f32 %v529_v20, %v2928_v12  ;;  %v534_v43 = vadd.f32 %v530_v34, %v2931_v15  ;;  %v535_v57 = vadd.f32 %v531_v49, %v2938_v31  ;;  %v536_v24 = vadd.f32 %v532_v13, %v2944_v56 }
 0x21c   :  { %2440 = vtanh.f32 %v3005_v30 }
 0x226   :  { %v2441_v6 = vpop.eup %2440 }
 0x227   :  { %v514_v5 = vmul.f32 %v2441_v6, %v2439_v26 }
 0x229   :  { %602 = vmatmul.mubr.f32.vlgmr.msra.gmra.mrb[4].mxu0 %v514_v5  ;;  %673 = vmatmul.mubr.f32.vlgmr.msra.gmra.mrb[4].mxu1 %v514_v5 }
 0x22a   :  { %2063 = vmatpush1.bf16.msra.mxu0 %v2601_v10  ;;  %2095 = vmatpush1.bf16.msra.mxu1 %v2613_v14 }
 0x22b   :  { %2065 = vmatprep.subr.bf16.mxu0 %v2626_v18  ;;  %2097 = vmatprep.subr.bf16.mxu1 %v2628_v19 }
 0x22c   :  { %793 = vmatprep.mubr.f32.mxu0 %v2538_v3  ;;  %864 = vmatprep.mubr.f32.mxu1 %v2538_v3 }
 0x22e   :  { %2067 = vmatpush1.bf16.msra.mxu0 %v2640_v23  ;;  %2099 = vmatpush1.bf16.msra.mxu1 %v2653_v27 }
 0x22f   :  { %2069 = vmatprep.subr.bf16.mxu0 %v2655_v28  ;;  %2101 = vmatprep.subr.bf16.mxu1 %v2666_v32 }
 0x232   :  { %2071 = vmatpush1.bf16.msra.mxu0 %v2678_v36  ;;  %2103 = vmatpush1.bf16.msra.mxu1 %v2691_v40 }
 0x233   :  { %2073 = vmatprep.subr.bf16.mxu0 %v2693_v41  ;;  %2105 = vmatprep.subr.bf16.mxu1 %v2705_v45 }
 0x236   :  { %2075 = vmatpush1.bf16.msra.mxu0 %v2726_v52  ;;  %2107 = vmatpush1.bf16.msra.mxu1 %v2730_v53 }
 0x237   :  { %2077 = vmatprep.subr.bf16.mxu0 %v2732_v54  ;;  %2109 = vmatprep.subr.bf16.mxu1 %v2744_v58 }
 0x23a   :  { %2079 = vmatpush1.bf16.msra.mxu0 %v2762_v0  ;;  %2111 = vmatpush1.bf16.msra.mxu1 %v2766_v1 }
 0x23b   :  { %2081 = vmatprep.subr.bf16.mxu0 %v2768_v2  ;;  %2113 = vmatprep.subr.bf16.mxu1 %v2780_v8 }
 0x23e   :  { %2083 = vmatpush1.bf16.msra.mxu0 %v2798_v17  ;;  %2115 = vmatpush1.bf16.msra.mxu1 %v2805_v21 }
 0x23f   :  { %2085 = vmatprep.subr.bf16.mxu0 %v2807_v22  ;;  %2117 = vmatprep.subr.bf16.mxu1 %v2819_v29 }
 0x242   :  { %2087 = vmatpush1.bf16.msra.mxu0 %v2840_v38  ;;  %2119 = vmatpush1.bf16.msra.mxu1 %v2844_v39 }
 0x243   :  { %2089 = vmatprep.subr.bf16.mxu0 %v2846_v42  ;;  %2121 = vmatprep.subr.bf16.mxu1 %v2855_v46 }
 0x246   :  { %2091 = vmatpush1.bf16.msra.mxu0 %v2867_v50  ;;  %2123 = vmatpush1.bf16.msra.mxu1 %v2871_v51 }
 0x247   :  { %2125 = vmatprep.subr.bf16.mxu0 %v2588_v4  ;;  %2157 = vmatprep.subr.bf16.mxu1 %v2599_v9 }
 0x2fc   :  { %v603_v44 = vpop.f32.mrb[4].mxu0  ;;  %v674_v47 = vpop.f32.mrb[4].mxu1 }
 0x2fd   :  { %v679_v48 = vadd.f32 %v603_v44, %v533_v37  ;;  %v605_v55 = vpop.f32.mrb[5].mxu0  ;;  %v676_v59 = vpop.f32.mrb[5].mxu1  ;;  %v681_v25 = vadd.f32 %v674_v47, %v535_v57 }
 0x2fe   :  { %v680_v60 = vadd.f32 %v605_v55, %v534_v43  ;;  %v682_v11 = vadd.f32 %v676_v59, %v536_v24 }
 0x2ff   :  { %v1790_v61 = vmul.f32 -1.442695, %v679_v48  ;;  %v1792_v26 = vmul.f32 -1.442695, %v681_v25 }
 0x300   :  { %v1791_v7 = vmul.f32 -1.442695, %v680_v60 }
 0x301   :  { %2442 = vpow2.f32 %v1790_v61 }
 0x302   :  { %2444 = vpow2.f32 %v1791_v7 }
 0x303   :  { %2446 = vtanh.f32 %v682_v11 }
 0x304   :  { %2448 = vpow2.f32 %v1792_v26 }
 0x30b   :  { %v2443_v6 = vpop.eup %2442 }
 0x30c   :  { %v692_v5 = vadd.f32 1.0, %v2443_v6  ;;  %v2445_v20 = vpop.eup %2444 }
 0x30d   :  { %v693_v34 = vadd.f32 1.0, %v2445_v20  ;;  %v2447_v37 = vpop.eup %2446 }
 0x30e   :  { %2450 = vrcp.f32 %v692_v5  ;;  %v2449_v43 = vpop.eup %2448 }
 0x30f   :  { %2452 = vrcp.f32 %v693_v34  ;;  %v694_v49 = vadd.f32 1.0, %v2449_v43 }
 0x311   :  { %2454 = vrcp.f32 %v694_v49 }
 0x318   :  { %v2451_v35 = vpop.eup %2450 }
 0x319   :  { %v703_v44 = vmul.f32 %v2451_v35, %v2447_v37  ;;  %v2453_v48 = vpop.eup %2452 }
 0x31a   :  { %v702_v55 = vmul.f32 %v2453_v48, %v3005_v30  ;;  %v719_v30 = vpop.permute.xlu1 %718 }
 0x31b   :  { %v2455_v47 = vpop.eup %2454  ;;  %v721_v7 = vmul.f32 %v719_v30, %v2920_v62  ;;  %v722_v13 = vmul.f32 %v719_v30, %v2922_v63  ;;  %v723_v37 = vmul.f32 %v719_v30, %v2933_v16  ;;  %v724_v35 = vmul.f32 %v719_v30, %v2940_v33 }
 0x31c   :  { %v3051_v60 = vadd.f32 %v703_v44, %v702_v55 }
 0x31d   :  { %v725_v57 = vadd.f32 %v721_v7, %v2928_v12  ;;  %v726_v11 = vadd.f32 %v722_v13, %v2931_v15  ;;  %v727_v44 = vadd.f32 %v723_v37, %v2938_v31  ;;  %v728_v49 = vadd.f32 %v724_v35, %v2944_v56 }
 0x31e   :  { %2456 = vtanh.f32 %v3051_v60 }
 0x328   :  { %v2457_v59 = vpop.eup %2456 }
 0x329   :  { %v706_v61 = vmul.f32 %v2457_v59, %v2455_v47 }
 0x32b   :  { %794 = vmatmul.mubr.f32.vlgmr.msra.gmra.mrb[6].mxu0 %v706_v61  ;;  %865 = vmatmul.mubr.f32.vlgmr.msra.gmra.mrb[6].mxu1 %v706_v61 }
 0x32c   :  { %2127 = vmatpush1.bf16.msra.mxu0 %v2601_v10  ;;  %2159 = vmatpush1.bf16.msra.mxu1 %v2613_v14 }
 0x32d   :  { %2129 = vmatprep.subr.bf16.mxu0 %v2626_v18  ;;  %2161 = vmatprep.subr.bf16.mxu1 %v2628_v19 }
 0x32e   :  { %985 = vmatprep.mubr.f32.mxu0 %v2538_v3  ;;  %1056 = vmatprep.mubr.f32.mxu1 %v2538_v3 }
 0x330   :  { %2131 = vmatpush1.bf16.msra.mxu0 %v2640_v23  ;;  %2163 = vmatpush1.bf16.msra.mxu1 %v2653_v27 }
 0x331   :  { %2133 = vmatprep.subr.bf16.mxu0 %v2655_v28  ;;  %2165 = vmatprep.subr.bf16.mxu1 %v2666_v32 }
 0x334   :  { %2135 = vmatpush1.bf16.msra.mxu0 %v2678_v36  ;;  %2167 = vmatpush1.bf16.msra.mxu1 %v2691_v40 }
 0x335   :  { %2137 = vmatprep.subr.bf16.mxu0 %v2693_v41  ;;  %2169 = vmatprep.subr.bf16.mxu1 %v2705_v45 }
 0x338   :  { %2139 = vmatpush1.bf16.msra.mxu0 %v2726_v52  ;;  %2171 = vmatpush1.bf16.msra.mxu1 %v2730_v53 }
 0x339   :  { %2141 = vmatprep.subr.bf16.mxu0 %v2732_v54  ;;  %2173 = vmatprep.subr.bf16.mxu1 %v2744_v58 }
 0x33c   :  { %2143 = vmatpush1.bf16.msra.mxu0 %v2762_v0  ;;  %2175 = vmatpush1.bf16.msra.mxu1 %v2766_v1 }
 0x33d   :  { %2145 = vmatprep.subr.bf16.mxu0 %v2768_v2  ;;  %2177 = vmatprep.subr.bf16.mxu1 %v2780_v8 }
 0x340   :  { %2147 = vmatpush1.bf16.msra.mxu0 %v2798_v17  ;;  %2179 = vmatpush1.bf16.msra.mxu1 %v2805_v21 }
 0x341   :  { %2149 = vmatprep.subr.bf16.mxu0 %v2807_v22  ;;  %2181 = vmatprep.subr.bf16.mxu1 %v2819_v29 }
 0x344   :  { %2151 = vmatpush1.bf16.msra.mxu0 %v2840_v38  ;;  %2183 = vmatpush1.bf16.msra.mxu1 %v2844_v39 }
 0x345   :  { %2153 = vmatprep.subr.bf16.mxu0 %v2846_v42  ;;  %2185 = vmatprep.subr.bf16.mxu1 %v2855_v46 }
 0x348   :  { %2155 = vmatpush1.bf16.msra.mxu0 %v2867_v50  ;;  %2187 = vmatpush1.bf16.msra.mxu1 %v2871_v51 }
 0x349   :  { %2189 = vmatprep.subr.bf16.mxu0 %v2588_v4  ;;  %2221 = vmatprep.subr.bf16.mxu1 %v2599_v9 }
 0x3fe   :  { %v795_v24 = vpop.f32.mrb[6].mxu0  ;;  %v866_v25 = vpop.f32.mrb[6].mxu1 }
 0x3ff   :  { %v871_v26 = vadd.f32 %v795_v24, %v725_v57  ;;  %v797_v6 = vpop.f32.mrb[7].mxu0  ;;  %v868_v5 = vpop.f32.mrb[7].mxu1  ;;  %v873_v48 = vadd.f32 %v866_v25, %v727_v44 }
 0x400   :  { %v872_v20 = vadd.f32 %v797_v6, %v726_v11  ;;  %v874_v55 = vadd.f32 %v868_v5, %v728_v49 }
 0x401   :  { %v1794_v34 = vmul.f32 -1.442695, %v871_v26  ;;  %v1796_v47 = vmul.f32 -1.442695, %v873_v48 }
 0x402   :  { %v1795_v43 = vmul.f32 -1.442695, %v872_v20 }
 0x403   :  { %2458 = vpow2.f32 %v1794_v34 }
 0x404   :  { %2460 = vpow2.f32 %v1795_v43 }
 0x405   :  { %2462 = vtanh.f32 %v874_v55 }
 0x406   :  { %2464 = vpow2.f32 %v1796_v47 }
 0x40d   :  { %v2459_v59 = vpop.eup %2458 }
 0x40e   :  { %v884_v61 = vadd.f32 1.0, %v2459_v59  ;;  %v2461_v7 = vpop.eup %2460 }
 0x40f   :  { %v885_v13 = vadd.f32 1.0, %v2461_v7  ;;  %v2463_v57 = vpop.eup %2462 }
 0x410   :  { %2466 = vrcp.f32 %v884_v61  ;;  %v2465_v24 = vpop.eup %2464 }
 0x411   :  { %2468 = vrcp.f32 %v885_v13  ;;  %v886_v6 = vadd.f32 1.0, %v2465_v24 }
 0x413   :  { %2470 = vrcp.f32 %v886_v6 }
 0x41a   :  { %v2467_v11 = vpop.eup %2466 }
 0x41b   :  { %v895_v30 = vmul.f32 %v2467_v11, %v2463_v57  ;;  %v2469_v26 = vpop.eup %2468 }
 0x41c   :  { %v894_v25 = vmul.f32 %v2469_v26, %v3051_v60  ;;  %v911_v60 = vpop.permute.xlu0 %910 }
 0x41d   :  { %v2471_v5 = vpop.eup %2470  ;;  %v913_v43 = vmul.f32 %v911_v60, %v2920_v62  ;;  %v914_v35 = vmul.f32 %v911_v60, %v2922_v63  ;;  %v915_v57 = vmul.f32 %v911_v60, %v2933_v16  ;;  %v916_v11 = vmul.f32 %v911_v60, %v2940_v33 }
 0x41e   :  { %v3097_v20 = vadd.f32 %v895_v30, %v894_v25 }
 0x41f   :  { %v917_v44 = vadd.f32 %v913_v43, %v2928_v12  ;;  %v918_v55 = vadd.f32 %v914_v35, %v2931_v15  ;;  %v919_v30 = vadd.f32 %v915_v57, %v2938_v31  ;;  %v920_v6 = vadd.f32 %v916_v11, %v2944_v56 }
 0x420   :  { %2472 = vtanh.f32 %v3097_v20 }
 0x42a   :  { %v2473_v34 = vpop.eup %2472 }
 0x42b   :  { %v898_v37 = vmul.f32 %v2473_v34, %v2471_v5 }
 0x42d   :  { %986 = vmatmul.mubr.f32.vlgmr.msra.gmra.mrb[8].mxu0 %v898_v37  ;;  %1057 = vmatmul.mubr.f32.vlgmr.msra.gmra.mrb[8].mxu1 %v898_v37 }
 0x42e   :  { %2191 = vmatpush1.bf16.msra.mxu0 %v2601_v10  ;;  %2223 = vmatpush1.bf16.msra.mxu1 %v2613_v14 }
 0x42f   :  { %2193 = vmatprep.subr.bf16.mxu0 %v2626_v18  ;;  %2225 = vmatprep.subr.bf16.mxu1 %v2628_v19 }
 0x430   :  { %1177 = vmatprep.mubr.f32.mxu0 %v2538_v3  ;;  %1248 = vmatprep.mubr.f32.mxu1 %v2538_v3 }
 0x432   :  { %2195 = vmatpush1.bf16.msra.mxu0 %v2640_v23  ;;  %2227 = vmatpush1.bf16.msra.mxu1 %v2653_v27 }
 0x433   :  { %2197 = vmatprep.subr.bf16.mxu0 %v2655_v28  ;;  %2229 = vmatprep.subr.bf16.mxu1 %v2666_v32 }
 0x436   :  { %2199 = vmatpush1.bf16.msra.mxu0 %v2678_v36  ;;  %2231 = vmatpush1.bf16.msra.mxu1 %v2691_v40 }
 0x437   :  { %2201 = vmatprep.subr.bf16.mxu0 %v2693_v41  ;;  %2233 = vmatprep.subr.bf16.mxu1 %v2705_v45 }
 0x43a   :  { %2203 = vmatpush1.bf16.msra.mxu0 %v2726_v52  ;;  %2235 = vmatpush1.bf16.msra.mxu1 %v2730_v53 }
 0x43b   :  { %2205 = vmatprep.subr.bf16.mxu0 %v2732_v54  ;;  %2237 = vmatprep.subr.bf16.mxu1 %v2744_v58 }
 0x43e   :  { %2207 = vmatpush1.bf16.msra.mxu0 %v2762_v0  ;;  %2239 = vmatpush1.bf16.msra.mxu1 %v2766_v1 }
 0x43f   :  { %2209 = vmatprep.subr.bf16.mxu0 %v2768_v2  ;;  %2241 = vmatprep.subr.bf16.mxu1 %v2780_v8 }
 0x442   :  { %2211 = vmatpush1.bf16.msra.mxu0 %v2798_v17  ;;  %2243 = vmatpush1.bf16.msra.mxu1 %v2805_v21 }
 0x443   :  { %2213 = vmatprep.subr.bf16.mxu0 %v2807_v22  ;;  %2245 = vmatprep.subr.bf16.mxu1 %v2819_v29 }
 0x446   :  { %2215 = vmatpush1.bf16.msra.mxu0 %v2840_v38  ;;  %2247 = vmatpush1.bf16.msra.mxu1 %v2844_v39 }
 0x447   :  { %2217 = vmatprep.subr.bf16.mxu0 %v2846_v42  ;;  %2249 = vmatprep.subr.bf16.mxu1 %v2855_v46 }
 0x44a   :  { %2219 = vmatpush1.bf16.msra.mxu0 %v2867_v50  ;;  %2251 = vmatpush1.bf16.msra.mxu1 %v2871_v51 }
 0x44b   :  { %2253 = vmatprep.subr.bf16.mxu0 %v2588_v4  ;;  %2285 = vmatprep.subr.bf16.mxu1 %v2599_v9 }
 0x500   :  { %v987_v48 = vpop.f32.mrb[8].mxu0  ;;  %v1058_v49 = vpop.f32.mrb[8].mxu1 }
 0x501   :  { %v1063_v47 = vadd.f32 %v987_v48, %v917_v44  ;;  %v989_v59 = vpop.f32.mrb[9].mxu0  ;;  %v1060_v61 = vpop.f32.mrb[9].mxu1  ;;  %v1065_v26 = vadd.f32 %v1058_v49, %v919_v30 }
 0x502   :  { %v1064_v7 = vadd.f32 %v989_v59, %v918_v55  ;;  %v1066_v25 = vadd.f32 %v1060_v61, %v920_v6 }
 0x503   :  { %v1798_v13 = vmul.f32 -1.442695, %v1063_v47  ;;  %v1800_v5 = vmul.f32 -1.442695, %v1065_v26 }
 0x504   :  { %v1799_v24 = vmul.f32 -1.442695, %v1064_v7 }
 0x505   :  { %2474 = vpow2.f32 %v1798_v13 }
 0x506   :  { %2476 = vpow2.f32 %v1799_v24 }
 0x507   :  { %2478 = vtanh.f32 %v1066_v25 }
 0x508   :  { %2480 = vpow2.f32 %v1800_v5 }
 0x50f   :  { %v2475_v34 = vpop.eup %2474 }
 0x510   :  { %v1076_v37 = vadd.f32 1.0, %v2475_v34  ;;  %v2477_v43 = vpop.eup %2476 }
 0x511   :  { %v1077_v35 = vadd.f32 1.0, %v2477_v43  ;;  %v2479_v44 = vpop.eup %2478 }
 0x512   :  { %2482 = vrcp.f32 %v1076_v37  ;;  %v2481_v48 = vpop.eup %2480 }
 0x513   :  { %2484 = vrcp.f32 %v1077_v35  ;;  %v1078_v59 = vadd.f32 1.0, %v2481_v48 }
 0x515   :  { %2486 = vrcp.f32 %v1078_v59 }
 0x51c   :  { %v2483_v55 = vpop.eup %2482 }
 0x51d   :  { %v1087_v60 = vmul.f32 %v2483_v55, %v2479_v44  ;;  %v2485_v47 = vpop.eup %2484 }
 0x51e   :  { %v1086_v49 = vmul.f32 %v2485_v47, %v3097_v20  ;;  %v1103_v20 = vpop.permute.xlu1 %1102 }
 0x51f   :  { %v2487_v61 = vpop.eup %2486  ;;  %v1105_v24 = vmul.f32 %v1103_v20, %v2920_v62  ;;  %v1106_v11 = vmul.f32 %v1103_v20, %v2922_v63 }
 0x520   :  { %v3143_v7 = vadd.f32 %v1087_v60, %v1086_v49 }
 0x521   :  { %v1109_v30 = vadd.f32 %v1105_v24, %v2928_v12  ;;  %v1110_v25 = vadd.f32 %v1106_v11, %v2931_v15 }
 0x522   :  { %2488 = vtanh.f32 %v3143_v7 }
 0x52c   :  { %v2489_v13 = vpop.eup %2488 }
 0x52d   :  { %v1090_v57 = vmul.f32 %v2489_v13, %v2487_v61 }
 0x52f   :  { %1178 = vmatmul.mubr.f32.vlgmr.msra.gmra.mrb[10].mxu0 %v1090_v57  ;;  %1249 = vmatmul.mubr.f32.vlgmr.msra.gmra.mrb[10].mxu1 %v1090_v57 }
 0x530   :  { %2255 = vmatpush1.bf16.msra.mxu0 %v2601_v10  ;;  %2287 = vmatpush1.bf16.msra.mxu1 %v2613_v14 }
 0x531   :  { %2257 = vmatprep.subr.bf16.mxu0 %v2626_v18  ;;  %2289 = vmatprep.subr.bf16.mxu1 %v2628_v19 }
 0x532   :  { %1369 = vmatprep.mubr.f32.mxu0 %v2538_v3  ;;  %1440 = vmatprep.mubr.f32.mxu1 %v2538_v3 }
 0x534   :  { %2259 = vmatpush1.bf16.msra.mxu0 %v2640_v23  ;;  %2291 = vmatpush1.bf16.msra.mxu1 %v2653_v27 }
 0x535   :  { %2261 = vmatprep.subr.bf16.mxu0 %v2655_v28  ;;  %2293 = vmatprep.subr.bf16.mxu1 %v2666_v32 }
 0x538   :  { %2263 = vmatpush1.bf16.msra.mxu0 %v2678_v36  ;;  %2295 = vmatpush1.bf16.msra.mxu1 %v2691_v40 }
 0x539   :  { %2265 = vmatprep.subr.bf16.mxu0 %v2693_v41  ;;  %2297 = vmatprep.subr.bf16.mxu1 %v2705_v45 }
 0x53c   :  { %2267 = vmatpush1.bf16.msra.mxu0 %v2726_v52  ;;  %2299 = vmatpush1.bf16.msra.mxu1 %v2730_v53 }
 0x53d   :  { %2269 = vmatprep.subr.bf16.mxu0 %v2732_v54  ;;  %2301 = vmatprep.subr.bf16.mxu1 %v2744_v58 }
 0x540   :  { %2271 = vmatpush1.bf16.msra.mxu0 %v2762_v0  ;;  %2303 = vmatpush1.bf16.msra.mxu1 %v2766_v1 }
 0x541   :  { %2273 = vmatprep.subr.bf16.mxu0 %v2768_v2  ;;  %2305 = vmatprep.subr.bf16.mxu1 %v2780_v8 }
 0x544   :  { %2275 = vmatpush1.bf16.msra.mxu0 %v2798_v17  ;;  %2307 = vmatpush1.bf16.msra.mxu1 %v2805_v21 }
 0x545   :  { %2277 = vmatprep.subr.bf16.mxu0 %v2807_v22  ;;  %2309 = vmatprep.subr.bf16.mxu1 %v2819_v29 }
 0x548   :  { %2279 = vmatpush1.bf16.msra.mxu0 %v2840_v38  ;;  %2311 = vmatpush1.bf16.msra.mxu1 %v2844_v39 }
 0x549   :  { %2281 = vmatprep.subr.bf16.mxu0 %v2846_v42  ;;  %2313 = vmatprep.subr.bf16.mxu1 %v2855_v46 }
 0x54c   :  { %2283 = vmatpush1.bf16.msra.mxu0 %v2867_v50  ;;  %2315 = vmatpush1.bf16.msra.mxu1 %v2871_v51 }
 0x54d   :  { %2317 = vmatprep.subr.bf16.mxu0 %v2588_v4  ;;  %2349 = vmatprep.subr.bf16.mxu1 %v2599_v9  ;;  %v1107_v4 = vmul.f32 %v1103_v20, %v2933_v16  ;;  %v1108_v9 = vmul.f32 %v1103_v20, %v2940_v33 }
 0x54f   :  { %v1111_v48 = vadd.f32 %v1107_v4, %v2938_v31  ;;  %v1112_v60 = vadd.f32 %v1108_v9, %v2944_v56 }
 0x602   :  { %v1179_v26 = vpop.f32.mrb[10].mxu0  ;;  %v1250_v6 = vpop.f32.mrb[10].mxu1 }
 0x603   :  { %v1255_v5 = vadd.f32 %v1179_v26, %v1109_v30  ;;  %v1181_v34 = vpop.f32.mrb[11].mxu0  ;;  %v1252_v37 = vpop.f32.mrb[11].mxu1  ;;  %v1257_v55 = vadd.f32 %v1250_v6, %v1111_v48  ;;  %v1683_v48 = vld [vmem:[%s3310_s4] sm:$0xff] }
 0x604   :  { %v1256_v43 = vadd.f32 %v1181_v34, %v1110_v25  ;;  %v1258_v47 = vadd.f32 %v1252_v37, %v1112_v60 }
 0x605   :  { %v1802_v35 = vmul.f32 -1.442695, %v1255_v5  ;;  %v1804_v59 = vmul.f32 -1.442695, %v1257_v55  ;;  %v1684_v55 = vld [vmem:[%s3310_s4 + $0x8] sm:$0xff] }
 0x606   :  { %v1803_v44 = vmul.f32 -1.442695, %v1256_v43  ;;  %v2381_v60 = vpack.c.bf16 %v1684_v55, %v1683_v48 }
 0x607   :  { %2490 = vpow2.f32 %v1802_v35 }
 0x608   :  { %2492 = vpow2.f32 %v1803_v44 }
 0x609   :  { %2494 = vtanh.f32 %v1258_v47  ;;  %v2540_v47 = vmov 0.0|0.0  }
 0x60a   :  { %2496 = vpow2.f32 %v1804_v59  ;;  %v1685_v59 = vld [vmem:[%s3310_s4 + $0x10] sm:$0xff] }
 0x611   :  { %v2491_v49 = vpop.eup %2490 }
 0x612   :  { %v1268_v61 = vadd.f32 1.0, %v2491_v49  ;;  %v2493_v13 = vpop.eup %2492  ;;  %v1686_v49 = vld [vmem:[%s3310_s4 + $0x18] sm:$0xff] }
 0x613   :  { %v1269_v57 = vadd.f32 1.0, %v2493_v13  ;;  %v2495_v24 = vpop.eup %2494  ;;  %v1687_v13 = vld [vmem:[%s3310_s4 + $0x20] sm:$0xff] }
 0x614   :  { %2498 = vrcp.f32 %v1268_v61  ;;  %v2497_v11 = vpop.eup %2496  ;;  %v2384_v61 = vpack.c.bf16 %v1686_v49, %v1685_v59 }
 0x615   :  { %2500 = vrcp.f32 %v1269_v57  ;;  %v1270_v25 = vadd.f32 1.0, %v2497_v11  ;;  %v1688_v57 = vld [vmem:[%s3310_s4 + $0x28] sm:$0xff]  ;;  %v1689_v11 = vld [vmem:[%s3310_s4 + $0x30] sm:$0xff] }
 0x617   :  { %2502 = vrcp.f32 %v1270_v25  ;;  %v1692_v25 = vld [vmem:[%s3310_s4 + $0x48] sm:$0xff] }
 0x61e   :  { %v2499_v30 = vpop.eup %2498 }
 0x61f   :  { %v1279_v20 = vmul.f32 %v2499_v30, %v2495_v24  ;;  %v2501_v26 = vpop.eup %2500  ;;  %v2387_v24 = vpack.c.bf16 %v1688_v57, %v1687_v13  ;;  %v1690_v30 = vld [vmem:[%s3310_s4 + $0x38] sm:$0xff] }
 0x620   :  { %v1278_v6 = vmul.f32 %v2501_v26, %v3143_v7  ;;  %v1691_v26 = vld [vmem:[%s3310_s4 + $0x40] sm:$0xff] }
 0x621   :  { %v2503_v34 = vpop.eup %2502 }
 0x622   :  { %v3189_v5 = vadd.f32 %v1279_v20, %v1278_v6  ;;  %v2390_v20 = vpack.c.bf16 %v1690_v30, %v1689_v11  ;;  %v2393_v6 = vpack.c.bf16 %v1692_v25, %v1691_v26 }
 0x624   :  { %2504 = vtanh.f32 %v3189_v5 }
 0x62e   :  { %v2505_v37 = vpop.eup %2504 }
 0x62f   :  { %v1282_v43 = vmul.f32 %v2505_v37, %v2503_v34  ;;  %v1694_v34 = vld [vmem:[%s3310_s4 + $0x58] sm:$0xff] }
 0x631   :  { %1370 = vmatmul.mubr.f32.vlgmr.msra.gmra.mrb[12].mxu0 %v1282_v43  ;;  %1441 = vmatmul.mubr.f32.vlgmr.msra.gmra.mrb[12].mxu1 %v1282_v43  ;;  %v1695_v43 = vld [vmem:[%s3310_s4 + $0x60] sm:$0xff] }
 0x632   :  { %2319 = vmatpush1.bf16.msra.mxu0 %v2601_v10  ;;  %2351 = vmatpush1.bf16.msra.mxu1 %v2613_v14  ;;  %v1295_v10 = vpop.permute.xlu0 %1294 }
 0x633   :  { %2321 = vmatprep.subr.bf16.mxu0 %v2626_v18  ;;  %2353 = vmatprep.subr.bf16.mxu1 %v2628_v19  ;;  %v1297_v14 = vmul.f32 %v1295_v10, %v2920_v62  ;;  %v1298_v18 = vmul.f32 %v1295_v10, %v2922_v63 }
 0x634   :  { %1561 = vmatprep.mubr.f32.mxu0 %v2538_v3  ;;  %1632 = vmatprep.mubr.f32.mxu1 %v2538_v3 }
 0x635   :  { %v1301_v19 = vadd.f32 %v1297_v14, %v2928_v12 }
 0x636   :  { %2323 = vmatpush1.bf16.msra.mxu0 %v2640_v23  ;;  %2355 = vmatpush1.bf16.msra.mxu1 %v2653_v27 }
 0x637   :  { %2325 = vmatprep.subr.bf16.mxu0 %v2655_v28  ;;  %2357 = vmatprep.subr.bf16.mxu1 %v2666_v32  ;;  %v1302_v28 = vadd.f32 %v1298_v18, %v2931_v15  ;;  %v1697_v18 = vld [vmem:[%s3310_s4 + $0x70] sm:$0xff] }
 0x63a   :  { %2327 = vmatpush1.bf16.msra.mxu0 %v2678_v36  ;;  %2359 = vmatpush1.bf16.msra.mxu1 %v2691_v40 }
 0x63b   :  { %2329 = vmatprep.subr.bf16.mxu0 %v2693_v41  ;;  %2361 = vmatprep.subr.bf16.mxu1 %v2705_v45  ;;  %v1299_v45 = vmul.f32 %v1295_v10, %v2933_v16 }
 0x63e   :  { %2331 = vmatpush1.bf16.msra.mxu0 %v2726_v52  ;;  %2363 = vmatpush1.bf16.msra.mxu1 %v2730_v53 }
 0x63f   :  { %2333 = vmatprep.subr.bf16.mxu0 %v2732_v54  ;;  %2365 = vmatprep.subr.bf16.mxu1 %v2744_v58  ;;  %v1300_v54 = vmul.f32 %v1295_v10, %v2940_v33  ;;  %v1303_v58 = vadd.f32 %v1299_v45, %v2938_v31  ;;  %v1696_v10 = vld [vmem:[%s3310_s4 + $0x68] sm:$0xff] }
 0x640   :  { %v2399_v14 = vpack.c.bf16 %v1696_v10, %v1695_v43 }
 0x642   :  { %2335 = vmatpush1.bf16.msra.mxu0 %v2762_v0  ;;  %2367 = vmatpush1.bf16.msra.mxu1 %v2766_v1  ;;  %v1304_v1 = vadd.f32 %v1300_v54, %v2944_v56 }
 0x643   :  { %2337 = vmatprep.subr.bf16.mxu0 %v2768_v2  ;;  %2369 = vmatprep.subr.bf16.mxu1 %v2780_v8 }
 0x646   :  { %2339 = vmatpush1.bf16.msra.mxu0 %v2798_v17  ;;  %2371 = vmatpush1.bf16.msra.mxu1 %v2805_v21 }
 0x647   :  { %2341 = vmatprep.subr.bf16.mxu0 %v2807_v22  ;;  %2373 = vmatprep.subr.bf16.mxu1 %v2819_v29 }
 0x64a   :  { %2343 = vmatpush1.bf16.msra.mxu0 %v2840_v38  ;;  %2375 = vmatpush1.bf16.msra.mxu1 %v2844_v39 }
 0x64b   :  { %2345 = vmatprep.subr.bf16.mxu0 %v2846_v42  ;;  %2377 = vmatprep.subr.bf16.mxu1 %v2855_v46 }
 0x64e   :  { %2347 = vmatpush1.bf16.msra.mxu0 %v2867_v50  ;;  %2379 = vmatpush1.bf16.msra.mxu1 %v2871_v51 }
 0x64f   :  { %2380 = vmatprep.subr.bf16.mxu0 %v2540_v47 }
 0x704   :  { %v1371_v23 = vpop.f32.mrb[12].mxu0  ;;  %v1442_v27 = vpop.f32.mrb[12].mxu1 }
 0x705   :  { %v1447_v32 = vadd.f32 %v1371_v23, %v1301_v19  ;;  %v1373_v36 = vpop.f32.mrb[13].mxu0  ;;  %v1444_v40 = vpop.f32.mrb[13].mxu1  ;;  %v1449_v0 = vadd.f32 %v1442_v27, %v1303_v58  ;;  %v1698_v19 = vld [vmem:[%s3310_s4 + $0x78] sm:$0xff] }
 0x706   :  { %v1448_v41 = vadd.f32 %v1373_v36, %v1302_v28  ;;  %v1450_v2 = vadd.f32 %v1444_v40, %v1304_v1  ;;  %v2402_v23 = vpack.c.bf16 %v1698_v19, %v1697_v18  ;;  %v1487_v27 = vpop.permute.xlu1 %1486 }
 0x707   :  { %v1806_v52 = vmul.f32 -1.442695, %v1447_v32  ;;  %v1808_v8 = vmul.f32 -1.442695, %v1449_v0  ;;  %v1489_v28 = vmul.f32 %v1487_v27, %v2920_v62  ;;  %v1491_v58 = vmul.f32 %v1487_v27, %v2933_v16 }
 0x708   :  { %v1807_v53 = vmul.f32 -1.442695, %v1448_v41 }
 0x709   :  { %2506 = vpow2.f32 %v1806_v52  ;;  %v1493_v32 = vadd.f32 %v1489_v28, %v2928_v12  ;;  %v1495_v62 = vadd.f32 %v1491_v58, %v2938_v31 }
 0x70a   :  { %2508 = vpow2.f32 %v1807_v53 }
 0x70b   :  { %2510 = vtanh.f32 %v1450_v2  ;;  %v1492_v2 = vmul.f32 %v1487_v27, %v2940_v33 }
 0x70c   :  { %2512 = vpow2.f32 %v1808_v8 }
 0x70d   :  { %v1496_v12 = vadd.f32 %v1492_v2, %v2944_v56 }
 0x713   :  { %v2507_v17 = vpop.eup %2506 }
 0x714   :  { %v1460_v21 = vadd.f32 1.0, %v2507_v17  ;;  %v2509_v22 = vpop.eup %2508 }
 0x715   :  { %v1461_v29 = vadd.f32 1.0, %v2509_v22  ;;  %v2511_v38 = vpop.eup %2510 }
 0x716   :  { %2514 = vrcp.f32 %v1460_v21  ;;  %v2513_v39 = vpop.eup %2512 }
 0x717   :  { %2516 = vrcp.f32 %v1461_v29  ;;  %v1462_v51 = vadd.f32 1.0, %v2513_v39 }
 0x719   :  { %2518 = vrcp.f32 %v1462_v51 }
 0x720   :  { %v2515_v42 = vpop.eup %2514 }
 0x721   :  { %v1471_v46 = vmul.f32 %v2515_v42, %v2511_v38  ;;  %v2517_v50 = vpop.eup %2516 }
 0x722   :  { %v1470_v7 = vmul.f32 %v2517_v50, %v3189_v5  ;;  %v1693_v5 = vld [vmem:[%s3310_s4 + $0x50] sm:$0xff] }
 0x723   :  { %v2519_v4 = vpop.eup %2518  ;;  %v2396_v37 = vpack.c.bf16 %v1694_v34, %v1693_v5 }
 0x724   :  { %v3233_v35 = vadd.f32 %v1471_v46, %v1470_v7 }
 0x726   :  { %2520 = vtanh.f32 %v3233_v35 }
 0x730   :  { %v2521_v44 = vpop.eup %2520 }
 0x731   :  { %v1474_v9 = vmul.f32 %v2521_v44, %v2519_v4 }
 0x733   :  { %1562 = vmatmul.mubr.f32.vlgmr.msra.gmra.mrb[14].mxu0 %v1474_v9  ;;  %1633 = vmatmul.mubr.f32.vlgmr.msra.gmra.mrb[14].mxu1 %v1474_v9 }
 0x734   :  { %2382 = vmatpush3.bf16.msra.mxu0 %v2381_v60  ;;  %1865 = vmatprep.mubr.msk.f32.mxu0 %vm2541_vm0, %v2538_v3  ;;  %v1490_v3 = vmul.f32 %v1487_v27, %v2922_v63 }
 0x735   :  { %2383 = vmatprep.subr.bf16.mxu0 %v2540_v47 }
 0x736   :  { %v1494_v41 = vadd.f32 %v1490_v3, %v2931_v15 }
 0x738   :  { %2385 = vmatpush3.bf16.msra.mxu0 %v2384_v61 }
 0x739   :  { %2386 = vmatprep.subr.bf16.mxu0 %v2540_v47 }
 0x73c   :  { %2388 = vmatpush3.bf16.msra.mxu0 %v2387_v24 }
 0x73d   :  { %2389 = vmatprep.subr.bf16.mxu0 %v2540_v47 }
 0x740   :  { %2391 = vmatpush3.bf16.msra.mxu0 %v2390_v20 }
 0x741   :  { %2392 = vmatprep.subr.bf16.mxu0 %v2540_v47 }
 0x744   :  { %2394 = vmatpush3.bf16.msra.mxu0 %v2393_v6 }
 0x745   :  { %2395 = vmatprep.subr.bf16.mxu0 %v2540_v47 }
 0x748   :  { %2397 = vmatpush3.bf16.msra.mxu0 %v2396_v37 }
 0x749   :  { %2398 = vmatprep.subr.bf16.mxu0 %v2540_v47 }
 0x74c   :  { %2400 = vmatpush3.bf16.msra.mxu0 %v2399_v14 }
 0x74d   :  { %2401 = vmatprep.subr.bf16.mxu0 %v2540_v47 }
 0x750   :  { %2403 = vmatpush3.bf16.msra.mxu0 %v2402_v23 }
 0x806   :  { %v1563_v36 = vpop.f32.mrb[14].mxu0  ;;  %v1634_v40 = vpop.f32.mrb[14].mxu1 }
 0x807   :  { %v1639_v45 = vadd.f32 %v1563_v36, %v1493_v32  ;;  %v1565_v52 = vpop.f32.mrb[15].mxu0  ;;  %v1636_v53 = vpop.f32.mrb[15].mxu1  ;;  %v1641_v63 = vadd.f32 %v1634_v40, %v1495_v62 }
 0x808   :  { %v1640_v54 = vadd.f32 %v1565_v52, %v1494_v41  ;;  %v1642_v8 = vadd.f32 %v1636_v53, %v1496_v12 }
 0x809   :  { %v1810_v0 = vmul.f32 -1.442695, %v1639_v45  ;;  %v1812_v17 = vmul.f32 -1.442695, %v1641_v63 }
 0x80a   :  { %v1811_v1 = vmul.f32 -1.442695, %v1640_v54 }
 0x80b   :  { %2522 = vpow2.f32 %v1810_v0 }
 0x80c   :  { %2524 = vpow2.f32 %v1811_v1 }
 0x80d   :  { %2526 = vtanh.f32 %v1642_v8 }
 0x80e   :  { %2528 = vpow2.f32 %v1812_v17 }
 0x815   :  { %v2523_v15 = vpop.eup %2522 }
 0x816   :  { %v1652_v21 = vadd.f32 1.0, %v2523_v15  ;;  %v2525_v22 = vpop.eup %2524 }
 0x817   :  { %v1653_v16 = vadd.f32 1.0, %v2525_v22  ;;  %v2527_v29 = vpop.eup %2526 }
 0x818   :  { %2530 = vrcp.f32 %v1652_v21  ;;  %v2529_v38 = vpop.eup %2528 }
 0x819   :  { %2532 = vrcp.f32 %v1653_v16  ;;  %v1654_v31 = vadd.f32 1.0, %v2529_v38 }
 0x81b   :  { %2534 = vrcp.f32 %v1654_v31 }
 0x822   :  { %v2531_v39 = vpop.eup %2530 }
 0x823   :  { %v1663_v33 = vmul.f32 %v2531_v39, %v2527_v29  ;;  %v2533_v42 = vpop.eup %2532 }
 0x824   :  { %v1662_v46 = vmul.f32 %v2533_v42, %v3233_v35  ;;  %v1814_v35 = vld [vmem:[%s3312_s5] ss:$0 sm:$0xff] }
 0x825   :  { %v2535_v56 = vpop.eup %2534 }
 0x826   :  { %v1664_v50 = vadd.f32 %v1663_v33, %v1662_v46 }
 0x828   :  { %2536 = vtanh.f32 %v1664_v50  ;;  %1813 = vst [vmem:[%s3311_s6 + $0x8] sm:$0xff] %v1664_v50 }
 0x832   :  { %v2537_v51 = vpop.eup %2536 }
 0x833   :  { %v1666_v7 = vmul.f32 %v2537_v51, %v2535_v56 }
 0x835   :  { %v1682_v4 = vmax.f32 %v1666_v7, 0.0  ;;  %1679 = vst [vmem:[%s3311_s6] sm:$0xff] %v1666_v7 }
 0x837   :  { %1866 = vmatmul.mubr.f32.vlgmr.msra.gmra.mrb[16].mxu0 %v1682_v4 }
 0x90a   :  { %v1772_v44 = vpop.f32.mrb[16].mxu0 }
 0x90b   :  { %v1773_v9 = vadd.f32 %v1814_v35, %v1772_v44  ;;  %v1867_v48 = vpop.f32.mrb[17].mxu0 }
 0x90d   :  { %1815 = vst [vmem:[%s3311_s6 + $0x10] sm:$0xff] %v1773_v9 }

</bundles_post_ra>
